<compile_context>
chip_gen: v6e
topology: v6e:2x2x1
jax: 0.10.0
libtpu: 0.0.40
codegen_flags: <defaults>
</compile_context>

<pallas_src>
import jax
import jax.numpy as jnp
from jax.experimental import pallas as pl
from jax.experimental.pallas import tpu as pltpu

HIDDEN = 256
WIDTH = 512
EPS = 1e-5


def domain_classifier_kernel(h_ref, w1_ref, w2_hbm, w3_hbm, w4_hbm, vecs_ref, out_ref,
                             w2_buf, w3_buf, w4_buf, dma_sem):
    # vecs_ref rows: [g1, be1, g2, be2, g3, be3, g4, be4, w5_row, b5_row]

    # Kick off the w2/w3/w4 HBM->VMEM copies immediately; they complete while the
    # MXU/VPU work through the earlier layers.
    cp2 = pltpu.make_async_copy(w2_hbm, w2_buf, dma_sem.at[0])
    cp3 = pltpu.make_async_copy(w3_hbm, w3_buf, dma_sem.at[1])
    cp4 = pltpu.make_async_copy(w4_hbm, w4_buf, dma_sem.at[2])
    cp2.start()
    cp3.start()
    cp4.start()

    inv_b = 1.0 / h_ref.shape[0]  # static

    def layer(x_bf16, w_ref, idx, last=False):
        # Linear (layer bias dropped: exactly cancelled by BN mean subtraction).
        z = jnp.dot(x_bf16, w_ref[...], preferred_element_type=jnp.float32)

        # One-pass batch statistics (biased variance, as nn.BatchNorm1d in training),
        # clamped so cancellation can never drive rsqrt's argument negative.
        s1 = jnp.sum(z, axis=0, keepdims=True)
        s2 = jnp.sum(z * z, axis=0, keepdims=True)
        mean = s1 * inv_b
        var = jnp.maximum(s2 * inv_b - mean * mean, 0.0)

        # Fold BN normalization + affine into a single per-feature scale/shift.
        gamma = vecs_ref[2 * idx:2 * idx + 1, :]
        beta = vecs_ref[2 * idx + 1:2 * idx + 2, :]
        scale = gamma * jax.lax.rsqrt(var + EPS)
        shift = beta - mean * scale

        y = jnp.maximum(z * scale + shift, 0.0)
        if last:
            return y                      # f32 feeds the VPU head directly
        return y.astype(jnp.bfloat16)     # bf16 operand for the next MXU matmul

    x = h_ref[...].astype(jnp.bfloat16)
    x = layer(x, w1_ref, 0)
    cp2.wait()
    x = layer(x, w2_buf, 1)
    cp3.wait()
    x = layer(x, w3_buf, 2)
    cp4.wait()
    x = layer(x, w4_buf, 3, last=True)

    # Final Linear(512, 1): VPU multiply + lane (XLU) reduction, all f32.
    w5_row = vecs_ref[8:9, :]          # (1, 512)
    b5 = vecs_ref[9:10, 0:1]           # (1, 1)
    out_ref[...] = jnp.sum(x * w5_row, axis=-1, keepdims=True) + b5


def init_params(key):
    """Deterministic synthetic parameters matching the PyTorch module's shapes.

    Hidden-layer weights are stored in bf16 (mixed-precision choice); everything
    else is f32. b1..b4 exist for module fidelity but are cancelled by training-mode BN.
    """
    shapes = [(HIDDEN, WIDTH), (WIDTH, WIDTH), (WIDTH, WIDTH), (WIDTH, WIDTH)]
    keys = jax.random.split(key, 4 * len(shapes) + 2)
    ki = 0
    params = []
    for fin, fout in shapes:
        w = (jax.random.normal(keys[ki], (fin, fout), jnp.float32)
             * (1.0 / jnp.sqrt(fin))).astype(jnp.bfloat16); ki += 1
        b = jax.random.normal(keys[ki], (1, fout), jnp.float32) * 0.01; ki += 1
        gamma = 1.0 + 0.1 * jax.random.normal(keys[ki], (1, fout), jnp.float32); ki += 1
        beta = 0.1 * jax.random.normal(keys[ki], (1, fout), jnp.float32); ki += 1
        params += [w, b, gamma, beta]
    w5 = jax.random.normal(keys[ki], (WIDTH, 1), jnp.float32) * (1.0 / jnp.sqrt(WIDTH)); ki += 1
    b5 = jax.random.normal(keys[ki], (1, 1), jnp.float32) * 0.01
    params += [w5, b5]
    return params


def pack_inputs(params):
    """Build consolidated kernel operands ONCE at init time (hoisted out of the call path):
    4 bf16 weights + one packed (10, 512) f32 vector array."""
    (w1, b1, g1, be1,
     w2, b2, g2, be2,
     w3, b3, g3, be3,
     w4, b4, g4, be4,
     w5, b5) = params
    b5_row = jnp.zeros((1, WIDTH), jnp.float32).at[0, 0].set(b5[0, 0])
    vecs = jnp.concatenate(
        [g1, be1, g2, be2, g3, be3, g4, be4, w5.reshape(1, WIDTH), b5_row], axis=0)
    return (w1, w2, w3, w4), vecs.astype(jnp.float32)


def domain_classifier(h, packed):
    (w1, w2, w3, w4), vecs = packed
    B = h.shape[0]
    vmem = pl.BlockSpec(memory_space=pltpu.MemorySpace.VMEM)
    hbm = pl.BlockSpec(memory_space=pl.ANY)   # w2/w3/w4 stay in HBM; kernel DMAs them
    return pl.pallas_call(
        domain_classifier_kernel,
        out_shape=jax.ShapeDtypeStruct((B, 1), jnp.float32),
        in_specs=[vmem, vmem, hbm, hbm, hbm, vmem],
        out_specs=vmem,
        scratch_shapes=[
            pltpu.VMEM((WIDTH, WIDTH), jnp.bfloat16),   # w2 landing buffer
            pltpu.VMEM((WIDTH, WIDTH), jnp.bfloat16),   # w3 landing buffer
            pltpu.VMEM((WIDTH, WIDTH), jnp.bfloat16),   # w4 landing buffer
            pltpu.SemaphoreType.DMA((3,)),
        ],
    )(h, w1, w2, w3, w4, vecs)


def reference(h, params):
    """Pure-JAX f32 reference with full PyTorch semantics (biases included; they cancel in BN)."""
    (w1, b1, g1, be1,
     w2, b2, g2, be2,
     w3, b3, g3, be3,
     w4, b4, g4, be4,
     w5, b5) = params
    x = h
    for (w, b, g, be) in [(w1, b1, g1, be1), (w2, b2, g2, be2),
                          (w3, b3, g3, be3), (w4, b4, g4, be4)]:
        x = x @ w.astype(jnp.float32) + b
        mean = jnp.mean(x, axis=0, keepdims=True)
        var = jnp.mean((x - mean) ** 2, axis=0, keepdims=True)
        x = (x - mean) * jax.lax.rsqrt(var + EPS) * g + be
        x = jnp.maximum(x, 0.0)
    return x @ w5 + b5


if __name__ == "__main__":
    key = jax.random.PRNGKey(0)
    k_h, k_p = jax.random.split(key)
    B = 8
    h = jax.random.normal(k_h, (B, HIDDEN), jnp.float32)
    params = init_params(k_p)

    # Pack once (init-time), reuse across calls.
    packed = jax.tree_util.tree_map(jax.block_until_ready, pack_inputs(params))

    y = jax.block_until_ready(domain_classifier(h, packed))
    y_ref = reference(h, params)

    assert y.shape == (B, 1), y.shape
    # Tolerance widened vs. pure-f32 because activations are cast to bf16 for the MXU
    # (accumulation stays f32); reference uses the same bf16-stored weights.
    assert jnp.allclose(y, y_ref, atol=5e-2, rtol=5e-2), (y, y_ref)
    print("KERNEL_OK")
</pallas_src>

<mosaic_0001>
module attributes {stable_mosaic.version = 11 : i64} {
  func.func @domain_classifier_kernel(%arg0: memref<8x256xf32, #tpu.memory_space<vmem>>, %arg1: memref<256x512xbf16, #tpu.memory_space<vmem>>, %arg2: memref<512x512xbf16, #tpu.memory_space<any>>, %arg3: memref<512x512xbf16, #tpu.memory_space<any>>, %arg4: memref<512x512xbf16, #tpu.memory_space<any>>, %arg5: memref<10x512xf32, #tpu.memory_space<vmem>>, %arg6: memref<8x1xf32, #tpu.memory_space<vmem>>, %arg7: memref<512x512xbf16, #tpu.memory_space<vmem>>, %arg8: memref<512x512xbf16, #tpu.memory_space<vmem>>, %arg9: memref<512x512xbf16, #tpu.memory_space<vmem>>, %arg10: memref<3x!tpu.dma_semaphore, #tpu.memory_space<semaphore_mem>>) attributes {dimension_semantics = [], scalar_prefetch = 0 : i64, scratch_operands = 4 : i64, tpu.core_type = #tpu.core_type<tc>} {
    %c0_i32 = arith.constant 0 : i32
    %0 = tpu.memref_slice %arg10[%c0_i32] : memref<3x!tpu.dma_semaphore, #tpu.memory_space<semaphore_mem>> -> memref<1x!tpu.dma_semaphore, #tpu.memory_space<semaphore_mem>>
    %1 = tpu.memref_squeeze %0 : memref<1x!tpu.dma_semaphore, #tpu.memory_space<semaphore_mem>> -> memref<!tpu.dma_semaphore, #tpu.memory_space<semaphore_mem>>
    tpu.enqueue_dma source(%arg2 : memref<512x512xbf16, #tpu.memory_space<any>>) target(%arg7 : memref<512x512xbf16, #tpu.memory_space<vmem>>) target_semaphore(%1 : memref<!tpu.dma_semaphore, #tpu.memory_space<semaphore_mem>>)
    %c1_i32 = arith.constant 1 : i32
    %2 = tpu.memref_slice %arg10[%c1_i32] : memref<3x!tpu.dma_semaphore, #tpu.memory_space<semaphore_mem>> -> memref<1x!tpu.dma_semaphore, #tpu.memory_space<semaphore_mem>>
    %3 = tpu.memref_squeeze %2 : memref<1x!tpu.dma_semaphore, #tpu.memory_space<semaphore_mem>> -> memref<!tpu.dma_semaphore, #tpu.memory_space<semaphore_mem>>
    tpu.enqueue_dma source(%arg3 : memref<512x512xbf16, #tpu.memory_space<any>>) target(%arg8 : memref<512x512xbf16, #tpu.memory_space<vmem>>) target_semaphore(%3 : memref<!tpu.dma_semaphore, #tpu.memory_space<semaphore_mem>>)
    %c2_i32 = arith.constant 2 : i32
    %4 = tpu.memref_slice %arg10[%c2_i32] : memref<3x!tpu.dma_semaphore, #tpu.memory_space<semaphore_mem>> -> memref<1x!tpu.dma_semaphore, #tpu.memory_space<semaphore_mem>>
    %5 = tpu.memref_squeeze %4 : memref<1x!tpu.dma_semaphore, #tpu.memory_space<semaphore_mem>> -> memref<!tpu.dma_semaphore, #tpu.memory_space<semaphore_mem>>
    tpu.enqueue_dma source(%arg4 : memref<512x512xbf16, #tpu.memory_space<any>>) target(%arg9 : memref<512x512xbf16, #tpu.memory_space<vmem>>) target_semaphore(%5 : memref<!tpu.dma_semaphore, #tpu.memory_space<semaphore_mem>>)
    %c0 = arith.constant 0 : index
    %c0_0 = arith.constant 0 : index
    %6 = vector.load %arg0[%c0, %c0_0] : memref<8x256xf32, #tpu.memory_space<vmem>>, vector<8x256xf32>
    %7 = arith.truncf %6 : vector<8x256xf32> to vector<8x256xbf16>
    %c0_1 = arith.constant 0 : index
    %c0_2 = arith.constant 0 : index
    %8 = vector.load %arg1[%c0_1, %c0_2] : memref<256x512xbf16, #tpu.memory_space<vmem>>, vector<256x512xbf16>
    %cst = arith.constant dense<0.000000e+00> : vector<8x512xf32>
    %9 = tpu.matmul %7, %8, %cst {dimension_numbers = #tpu.dot_dimension_numbers<[1], [0], [0], [1], [0, 0, 1, 1], [], []>} : vector<8x256xbf16>, vector<256x512xbf16>, vector<8x512xf32> -> vector<8x512xf32>
    %cst_3 = arith.constant dense<0.000000e+00> : vector<512xf32>
    %10 = vector.multi_reduction <add>, %9, %cst_3 [0] : vector<8x512xf32> to vector<512xf32>
    %11 = vector.shape_cast %10 : vector<512xf32> to vector<1x512xf32>
    %12 = arith.mulf %9, %9 : vector<8x512xf32>
    %cst_4 = arith.constant dense<0.000000e+00> : vector<512xf32>
    %13 = vector.multi_reduction <add>, %12, %cst_4 [0] : vector<8x512xf32> to vector<512xf32>
    %14 = vector.shape_cast %13 : vector<512xf32> to vector<1x512xf32>
    %cst_5 = arith.constant 1.250000e-01 : f32
    %15 = vector.broadcast %cst_5 : f32 to vector<1x512xf32>
    %16 = arith.mulf %11, %15 : vector<1x512xf32>
    %cst_6 = arith.constant 1.250000e-01 : f32
    %17 = vector.broadcast %cst_6 : f32 to vector<1x512xf32>
    %18 = arith.mulf %14, %17 : vector<1x512xf32>
    %19 = arith.mulf %16, %16 : vector<1x512xf32>
    %20 = arith.subf %18, %19 : vector<1x512xf32>
    %cst_7 = arith.constant 0.000000e+00 : f32
    %21 = vector.broadcast %cst_7 : f32 to vector<1x512xf32>
    %22 = arith.maximumf %20, %21 : vector<1x512xf32>
    %c0_8 = arith.constant 0 : index
    %c0_9 = arith.constant 0 : index
    %23 = vector.load %arg5[%c0_8, %c0_9] : memref<10x512xf32, #tpu.memory_space<vmem>>, vector<1x512xf32>
    %c1 = arith.constant 1 : index
    %c0_10 = arith.constant 0 : index
    %24 = vector.load %arg5[%c1, %c0_10] : memref<10x512xf32, #tpu.memory_space<vmem>>, vector<1x512xf32>
    %cst_11 = arith.constant 9.99999974E-6 : f32
    %25 = vector.broadcast %cst_11 : f32 to vector<1x512xf32>
    %26 = arith.addf %22, %25 : vector<1x512xf32>
    %27 = math.rsqrt %26 : vector<1x512xf32>
    %28 = arith.mulf %23, %27 : vector<1x512xf32>
    %29 = arith.mulf %16, %28 : vector<1x512xf32>
    %30 = arith.subf %24, %29 : vector<1x512xf32>
    %31 = vector.broadcast %28 : vector<1x512xf32> to vector<8x512xf32>
    %32 = arith.mulf %9, %31 : vector<8x512xf32>
    %33 = vector.broadcast %30 : vector<1x512xf32> to vector<8x512xf32>
    %34 = arith.addf %32, %33 : vector<8x512xf32>
    %cst_12 = arith.constant 0.000000e+00 : f32
    %35 = vector.broadcast %cst_12 : f32 to vector<8x512xf32>
    %36 = arith.maximumf %34, %35 : vector<8x512xf32>
    %37 = arith.truncf %36 : vector<8x512xf32> to vector<8x512xbf16>
    %c0_i32_13 = arith.constant 0 : i32
    %38 = tpu.memref_slice %arg10[%c0_i32_13] : memref<3x!tpu.dma_semaphore, #tpu.memory_space<semaphore_mem>> -> memref<1x!tpu.dma_semaphore, #tpu.memory_space<semaphore_mem>>
    %39 = tpu.memref_squeeze %38 : memref<1x!tpu.dma_semaphore, #tpu.memory_space<semaphore_mem>> -> memref<!tpu.dma_semaphore, #tpu.memory_space<semaphore_mem>>
    tpu.wait_dma2 semaphore(%39 : memref<!tpu.dma_semaphore, #tpu.memory_space<semaphore_mem>>) src(%arg2 : memref<512x512xbf16, #tpu.memory_space<any>>) dst(%arg7 : memref<512x512xbf16, #tpu.memory_space<vmem>>)
    %c0_14 = arith.constant 0 : index
    %c0_15 = arith.constant 0 : index
    %40 = vector.load %arg7[%c0_14, %c0_15] : memref<512x512xbf16, #tpu.memory_space<vmem>>, vector<512x512xbf16>
    %cst_16 = arith.constant dense<0.000000e+00> : vector<8x512xf32>
    %41 = tpu.matmul %37, %40, %cst_16 {dimension_numbers = #tpu.dot_dimension_numbers<[1], [0], [0], [1], [0, 0, 1, 1], [], []>} : vector<8x512xbf16>, vector<512x512xbf16>, vector<8x512xf32> -> vector<8x512xf32>
    %cst_17 = arith.constant dense<0.000000e+00> : vector<512xf32>
    %42 = vector.multi_reduction <add>, %41, %cst_17 [0] : vector<8x512xf32> to vector<512xf32>
    %43 = vector.shape_cast %42 : vector<512xf32> to vector<1x512xf32>
    %44 = arith.mulf %41, %41 : vector<8x512xf32>
    %cst_18 = arith.constant dense<0.000000e+00> : vector<512xf32>
    %45 = vector.multi_reduction <add>, %44, %cst_18 [0] : vector<8x512xf32> to vector<512xf32>
    %46 = vector.shape_cast %45 : vector<512xf32> to vector<1x512xf32>
    %cst_19 = arith.constant 1.250000e-01 : f32
    %47 = vector.broadcast %cst_19 : f32 to vector<1x512xf32>
    %48 = arith.mulf %43, %47 : vector<1x512xf32>
    %cst_20 = arith.constant 1.250000e-01 : f32
    %49 = vector.broadcast %cst_20 : f32 to vector<1x512xf32>
    %50 = arith.mulf %46, %49 : vector<1x512xf32>
    %51 = arith.mulf %48, %48 : vector<1x512xf32>
    %52 = arith.subf %50, %51 : vector<1x512xf32>
    %cst_21 = arith.constant 0.000000e+00 : f32
    %53 = vector.broadcast %cst_21 : f32 to vector<1x512xf32>
    %54 = arith.maximumf %52, %53 : vector<1x512xf32>
    %c2 = arith.constant 2 : index
    %c0_22 = arith.constant 0 : index
    %55 = vector.load %arg5[%c2, %c0_22] : memref<10x512xf32, #tpu.memory_space<vmem>>, vector<1x512xf32>
    %c3 = arith.constant 3 : index
    %c0_23 = arith.constant 0 : index
    %56 = vector.load %arg5[%c3, %c0_23] : memref<10x512xf32, #tpu.memory_space<vmem>>, vector<1x512xf32>
    %cst_24 = arith.constant 9.99999974E-6 : f32
    %57 = vector.broadcast %cst_24 : f32 to vector<1x512xf32>
    %58 = arith.addf %54, %57 : vector<1x512xf32>
    %59 = math.rsqrt %58 : vector<1x512xf32>
    %60 = arith.mulf %55, %59 : vector<1x512xf32>
    %61 = arith.mulf %48, %60 : vector<1x512xf32>
    %62 = arith.subf %56, %61 : vector<1x512xf32>
    %63 = vector.broadcast %60 : vector<1x512xf32> to vector<8x512xf32>
    %64 = arith.mulf %41, %63 : vector<8x512xf32>
    %65 = vector.broadcast %62 : vector<1x512xf32> to vector<8x512xf32>
    %66 = arith.addf %64, %65 : vector<8x512xf32>
    %cst_25 = arith.constant 0.000000e+00 : f32
    %67 = vector.broadcast %cst_25 : f32 to vector<8x512xf32>
    %68 = arith.maximumf %66, %67 : vector<8x512xf32>
    %69 = arith.truncf %68 : vector<8x512xf32> to vector<8x512xbf16>
    %c1_i32_26 = arith.constant 1 : i32
    %70 = tpu.memref_slice %arg10[%c1_i32_26] : memref<3x!tpu.dma_semaphore, #tpu.memory_space<semaphore_mem>> -> memref<1x!tpu.dma_semaphore, #tpu.memory_space<semaphore_mem>>
    %71 = tpu.memref_squeeze %70 : memref<1x!tpu.dma_semaphore, #tpu.memory_space<semaphore_mem>> -> memref<!tpu.dma_semaphore, #tpu.memory_space<semaphore_mem>>
    tpu.wait_dma2 semaphore(%71 : memref<!tpu.dma_semaphore, #tpu.memory_space<semaphore_mem>>) src(%arg3 : memref<512x512xbf16, #tpu.memory_space<any>>) dst(%arg8 : memref<512x512xbf16, #tpu.memory_space<vmem>>)
    %c0_27 = arith.constant 0 : index
    %c0_28 = arith.constant 0 : index
    %72 = vector.load %arg8[%c0_27, %c0_28] : memref<512x512xbf16, #tpu.memory_space<vmem>>, vector<512x512xbf16>
    %cst_29 = arith.constant dense<0.000000e+00> : vector<8x512xf32>
    %73 = tpu.matmul %69, %72, %cst_29 {dimension_numbers = #tpu.dot_dimension_numbers<[1], [0], [0], [1], [0, 0, 1, 1], [], []>} : vector<8x512xbf16>, vector<512x512xbf16>, vector<8x512xf32> -> vector<8x512xf32>
    %cst_30 = arith.constant dense<0.000000e+00> : vector<512xf32>
    %74 = vector.multi_reduction <add>, %73, %cst_30 [0] : vector<8x512xf32> to vector<512xf32>
    %75 = vector.shape_cast %74 : vector<512xf32> to vector<1x512xf32>
    %76 = arith.mulf %73, %73 : vector<8x512xf32>
    %cst_31 = arith.constant dense<0.000000e+00> : vector<512xf32>
    %77 = vector.multi_reduction <add>, %76, %cst_31 [0] : vector<8x512xf32> to vector<512xf32>
    %78 = vector.shape_cast %77 : vector<512xf32> to vector<1x512xf32>
    %cst_32 = arith.constant 1.250000e-01 : f32
    %79 = vector.broadcast %cst_32 : f32 to vector<1x512xf32>
    %80 = arith.mulf %75, %79 : vector<1x512xf32>
    %cst_33 = arith.constant 1.250000e-01 : f32
    %81 = vector.broadcast %cst_33 : f32 to vector<1x512xf32>
    %82 = arith.mulf %78, %81 : vector<1x512xf32>
    %83 = arith.mulf %80, %80 : vector<1x512xf32>
    %84 = arith.subf %82, %83 : vector<1x512xf32>
    %cst_34 = arith.constant 0.000000e+00 : f32
    %85 = vector.broadcast %cst_34 : f32 to vector<1x512xf32>
    %86 = arith.maximumf %84, %85 : vector<1x512xf32>
    %c4 = arith.constant 4 : index
    %c0_35 = arith.constant 0 : index
    %87 = vector.load %arg5[%c4, %c0_35] : memref<10x512xf32, #tpu.memory_space<vmem>>, vector<1x512xf32>
    %c5 = arith.constant 5 : index
    %c0_36 = arith.constant 0 : index
    %88 = vector.load %arg5[%c5, %c0_36] : memref<10x512xf32, #tpu.memory_space<vmem>>, vector<1x512xf32>
    %cst_37 = arith.constant 9.99999974E-6 : f32
    %89 = vector.broadcast %cst_37 : f32 to vector<1x512xf32>
    %90 = arith.addf %86, %89 : vector<1x512xf32>
    %91 = math.rsqrt %90 : vector<1x512xf32>
    %92 = arith.mulf %87, %91 : vector<1x512xf32>
    %93 = arith.mulf %80, %92 : vector<1x512xf32>
    %94 = arith.subf %88, %93 : vector<1x512xf32>
    %95 = vector.broadcast %92 : vector<1x512xf32> to vector<8x512xf32>
    %96 = arith.mulf %73, %95 : vector<8x512xf32>
    %97 = vector.broadcast %94 : vector<1x512xf32> to vector<8x512xf32>
    %98 = arith.addf %96, %97 : vector<8x512xf32>
    %cst_38 = arith.constant 0.000000e+00 : f32
    %99 = vector.broadcast %cst_38 : f32 to vector<8x512xf32>
    %100 = arith.maximumf %98, %99 : vector<8x512xf32>
    %101 = arith.truncf %100 : vector<8x512xf32> to vector<8x512xbf16>
    %c2_i32_39 = arith.constant 2 : i32
    %102 = tpu.memref_slice %arg10[%c2_i32_39] : memref<3x!tpu.dma_semaphore, #tpu.memory_space<semaphore_mem>> -> memref<1x!tpu.dma_semaphore, #tpu.memory_space<semaphore_mem>>
    %103 = tpu.memref_squeeze %102 : memref<1x!tpu.dma_semaphore, #tpu.memory_space<semaphore_mem>> -> memref<!tpu.dma_semaphore, #tpu.memory_space<semaphore_mem>>
    tpu.wait_dma2 semaphore(%103 : memref<!tpu.dma_semaphore, #tpu.memory_space<semaphore_mem>>) src(%arg4 : memref<512x512xbf16, #tpu.memory_space<any>>) dst(%arg9 : memref<512x512xbf16, #tpu.memory_space<vmem>>)
    %c0_40 = arith.constant 0 : index
    %c0_41 = arith.constant 0 : index
    %104 = vector.load %arg9[%c0_40, %c0_41] : memref<512x512xbf16, #tpu.memory_space<vmem>>, vector<512x512xbf16>
    %cst_42 = arith.constant dense<0.000000e+00> : vector<8x512xf32>
    %105 = tpu.matmul %101, %104, %cst_42 {dimension_numbers = #tpu.dot_dimension_numbers<[1], [0], [0], [1], [0, 0, 1, 1], [], []>} : vector<8x512xbf16>, vector<512x512xbf16>, vector<8x512xf32> -> vector<8x512xf32>
    %cst_43 = arith.constant dense<0.000000e+00> : vector<512xf32>
    %106 = vector.multi_reduction <add>, %105, %cst_43 [0] : vector<8x512xf32> to vector<512xf32>
    %107 = vector.shape_cast %106 : vector<512xf32> to vector<1x512xf32>
    %108 = arith.mulf %105, %105 : vector<8x512xf32>
    %cst_44 = arith.constant dense<0.000000e+00> : vector<512xf32>
    %109 = vector.multi_reduction <add>, %108, %cst_44 [0] : vector<8x512xf32> to vector<512xf32>
    %110 = vector.shape_cast %109 : vector<512xf32> to vector<1x512xf32>
    %cst_45 = arith.constant 1.250000e-01 : f32
    %111 = vector.broadcast %cst_45 : f32 to vector<1x512xf32>
    %112 = arith.mulf %107, %111 : vector<1x512xf32>
    %cst_46 = arith.constant 1.250000e-01 : f32
    %113 = vector.broadcast %cst_46 : f32 to vector<1x512xf32>
    %114 = arith.mulf %110, %113 : vector<1x512xf32>
    %115 = arith.mulf %112, %112 : vector<1x512xf32>
    %116 = arith.subf %114, %115 : vector<1x512xf32>
    %cst_47 = arith.constant 0.000000e+00 : f32
    %117 = vector.broadcast %cst_47 : f32 to vector<1x512xf32>
    %118 = arith.maximumf %116, %117 : vector<1x512xf32>
    %c6 = arith.constant 6 : index
    %c0_48 = arith.constant 0 : index
    %119 = vector.load %arg5[%c6, %c0_48] : memref<10x512xf32, #tpu.memory_space<vmem>>, vector<1x512xf32>
    %c7 = arith.constant 7 : index
    %c0_49 = arith.constant 0 : index
    %120 = vector.load %arg5[%c7, %c0_49] : memref<10x512xf32, #tpu.memory_space<vmem>>, vector<1x512xf32>
    %cst_50 = arith.constant 9.99999974E-6 : f32
    %121 = vector.broadcast %cst_50 : f32 to vector<1x512xf32>
    %122 = arith.addf %118, %121 : vector<1x512xf32>
    %123 = math.rsqrt %122 : vector<1x512xf32>
    %124 = arith.mulf %119, %123 : vector<1x512xf32>
    %125 = arith.mulf %112, %124 : vector<1x512xf32>
    %126 = arith.subf %120, %125 : vector<1x512xf32>
    %127 = vector.broadcast %124 : vector<1x512xf32> to vector<8x512xf32>
    %128 = arith.mulf %105, %127 : vector<8x512xf32>
    %129 = vector.broadcast %126 : vector<1x512xf32> to vector<8x512xf32>
    %130 = arith.addf %128, %129 : vector<8x512xf32>
    %cst_51 = arith.constant 0.000000e+00 : f32
    %131 = vector.broadcast %cst_51 : f32 to vector<8x512xf32>
    %132 = arith.maximumf %130, %131 : vector<8x512xf32>
    %c8 = arith.constant 8 : index
    %c0_52 = arith.constant 0 : index
    %133 = vector.load %arg5[%c8, %c0_52] : memref<10x512xf32, #tpu.memory_space<vmem>>, vector<1x512xf32>
    %c9 = arith.constant 9 : index
    %c0_53 = arith.constant 0 : index
    %134 = vector.load %arg5[%c9, %c0_53] : memref<10x512xf32, #tpu.memory_space<vmem>>, vector<1x1xf32>
    %135 = vector.broadcast %133 : vector<1x512xf32> to vector<8x512xf32>
    %136 = arith.mulf %132, %135 : vector<8x512xf32>
    %cst_54 = arith.constant dense<0.000000e+00> : vector<8xf32>
    %137 = vector.multi_reduction <add>, %136, %cst_54 [1] : vector<8x512xf32> to vector<8xf32>
    %138 = vector.shape_cast %137 : vector<8xf32> to vector<8x1xf32>
    %139 = vector.broadcast %134 : vector<1x1xf32> to vector<8x1xf32>
    %140 = arith.addf %138, %139 : vector<8x1xf32>
    %c0_55 = arith.constant 0 : index
    %c0_56 = arith.constant 0 : index
    %141 = vector.load %arg6[%c0_55, %c0_56] : memref<8x1xf32, #tpu.memory_space<vmem>>, vector<8x1xf32>
    tpu.vector_store %arg6[%c0_55, %c0_56], %140 {strides = array<i32>} : memref<8x1xf32, #tpu.memory_space<vmem>>, vector<8x1xf32>,
    return
  }
}

</mosaic_0001>

<bundles_post_ra>
// kernel: tpu_custom_call.1
= control target key start
LH: loop header
LB: loop body
LE: loop exit
PB: predicated region body
PF: predicated region fallthrough
CT: control target
= control target key end

     0   :  { %11 = vsyncpa [#allocation7], 0  ;;  %s5862_s0 = inlined_call_operand.hbm [shape: f32[8,256], index: 0, kind: input, shape index: {}]   ;;  %s5863_s1 = inlined_call_operand.hbm [shape: bf16[256,512], index: 1, kind: input, shape index: {}]   ;;  %s5864_s2 = inlined_call_operand.hbm [shape: bf16[512,512], index: 2, kind: input, shape index: {}]   ;;  %s5865_s3 = inlined_call_operand.hbm [shape: bf16[512,512], index: 3, kind: input, shape index: {}]   ;;  %s5866_s4 = inlined_call_operand.hbm [shape: bf16[512,512], index: 4, kind: input, shape index: {}]   ;;  %s5867_s5 = inlined_call_operand.hbm [shape: f32[10,512], index: 5, kind: input, shape index: {}]   ;;  %s5868_s6 = inlined_call_operand.vmem [shape: f32[8,1], index: 6, kind: output, shape index: {}]  }
   0x1   :  { %12 = vsyncpa [#allocation9], 0  ;;  %s5542_s21 = smov [#allocation8]  }
   0x2   :  { %s28_s22 = sshll.u32 %s5542_s21, 4  ;;  %s29_s22 = int_to_ptr.vmem [resolvable:$true] %s28_s22 }
   0x3   :  { %s5420_s23 = scalar_lea.vmem %s29_s22, 8192  ;;  %p5425_p1 = scmp.lt.s32.totalorder %s29_s22, %s29_s22 }
   0x4   :  { %p5421_p0 = scmp.ne.s32.totalorder %s29_s22, %s5420_s23  ;;  %p5426_p2 = scmp.lt.s32.totalorder %s5420_s23, %s5420_s23 }
   0x6   :  { %p5427_p3 = por %p5426_p2, %p5425_p1 }
   0x8   :  { %p5428_p4 = pnand %p5427_p3, %p5421_p0 }
   0xa   :  { %5431 = shalt.err (!%p5428_p4)
}
   0xb   :  { %s5543_s24 = smov 256   ;;  %s5544_s25 = smov 16  }
   0xc   :  { %34 = dma.hbm_to_vmem [thread:$0]  %s5863_s1, 8192, %s29_s22, [#allocation9], %s5543_s24, %s5543_s24, %s5544_s25  }
   0xd   :  { %s5545_s28 = smov [#allocation6]   ;;  %s5546_s30 = smov [#allocation10]  }
   0xe   :  { %s19_s29 = sshll.u32 %s5545_s28, 4  ;;  %s40_s7 = sshll.u32 %s5546_s30, 4  ;;  %s20_s29 = int_to_ptr.vmem [resolvable:$true] %s19_s29  ;;  %s41_s7 = int_to_ptr.vmem [resolvable:$true] %s40_s7 }
   0xf   :  { %s5440_s8 = scalar_lea.vmem %s20_s29, 256  ;;  %p5445_p6 = scmp.lt.s32.totalorder %s20_s29, %s20_s29 }
  0x10   :  { %p5441_p5 = scmp.ne.s32.totalorder %s20_s29, %s5440_s8  ;;  %p5446_p7 = scmp.lt.s32.totalorder %s5440_s8, %s5440_s8 }
  0x12   :  { %p5447_p8 = por %p5446_p7, %p5445_p6 }
  0x14   :  { %p5448_p9 = pnand %p5447_p8, %p5441_p5 }
  0x16   :  { %5451 = shalt.err (!%p5448_p9)
}
  0x17   :  { %22 = dma.hbm_to_vmem [thread:$0]  %s5862_s0, 256, %s20_s29, [#allocation7]  }
  0x18   :  { %s5460_s11 = scalar_lea.vmem %s41_s7, 1024  ;;  %p5465_p11 = scmp.lt.s32.totalorder %s41_s7, %s41_s7 }
  0x19   :  { %p5461_p10 = scmp.ne.s32.totalorder %s41_s7, %s5460_s11  ;;  %p5466_p12 = scmp.lt.s32.totalorder %s5460_s11, %s5460_s11 }
  0x1b   :  { %p5467_p13 = por %p5466_p12, %p5465_p11 }
  0x1d   :  { %p5468_p0 = pnand %p5467_p13, %p5461_p10 }
  0x1f   :  { %5471 = shalt.err (!%p5468_p0)
}
  0x20   :  { %s5547_s1 = smov 512   ;;  %s5548_s12 = smov 32  }
  0x21   :  { %46 = dma.hbm_to_vmem [thread:$0]  %s5867_s5, 1024, %s41_s7, [#allocation9], %s5547_s1, %s5547_s1, %s5548_s12  }
  0x22   :  { %5532 = dma.done.wait [#allocation7], 256  }
  0x23   :  { %5533 = vsyncadd [#allocation7], 4294967040 }
  0x24   :  { %5534 = dma.done.wait [#allocation9], 9216  }
  0x25   :  { %5535 = vsyncadd [#allocation9], 4294958080  ;;  %v4708_v0 = vld [vmem:[#allocation8 + $0xe4] ss:$16 sps:$4 sm:$0xff]   ;;  %v4710_v1 = vld [vmem:[#allocation8 + $0xec] ss:$16 sps:$4 sm:$0xff]  }
  0x26   :  { %479 = vmatprep.subr.bf16.mxu0 %v4708_v0  ;;  %v4712_v2 = vld [vmem:[#allocation8 + $0xe0] ss:$16 sps:$4 sm:$0xff]   ;;  %v4713_v3 = vld [vmem:[#allocation8 + $0xe8] ss:$16 sps:$4 sm:$0xff]   ;;  %520 = vmatprep.subr.bf16.mxu1 %v4710_v1  ;;  %v4714_v4 = vld [vmem:[#allocation8 + $0xc4] ss:$16 sps:$4 sm:$0xff]  }
  0x27   :  { %480 = vmatpush1.bf16.msra.mxu0 %v4712_v2  ;;  %521 = vmatpush1.bf16.msra.mxu1 %v4713_v3  ;;  %v4716_v5 = vld [vmem:[#allocation8 + $0xcc] ss:$16 sps:$4 sm:$0xff]   ;;  %v4718_v6 = vld [vmem:[#allocation8 + $0xc0] ss:$16 sps:$4 sm:$0xff]   ;;  %v4719_v7 = vld [vmem:[#allocation8 + $0xc8] ss:$16 sps:$4 sm:$0xff]  }
  0x28   :  { %481 = vmatprep.subr.bf16.mxu0 %v4714_v4  ;;  %522 = vmatprep.subr.bf16.mxu1 %v4716_v5  ;;  %v4720_v8 = vld [vmem:[#allocation8 + $0xa4] ss:$16 sps:$4 sm:$0xff]   ;;  %v4722_v9 = vld [vmem:[#allocation8 + $0xac] ss:$16 sps:$4 sm:$0xff]   ;;  %v4724_v10 = vld [vmem:[#allocation8 + $0xa0] ss:$16 sps:$4 sm:$0xff]  }
  0x29   :  { %v4725_v11 = vld [vmem:[#allocation8 + $0xa8] ss:$16 sps:$4 sm:$0xff]   ;;  %v4726_v12 = vld [vmem:[#allocation8 + $0x84] ss:$16 sps:$4 sm:$0xff]   ;;  %v4728_v13 = vld [vmem:[#allocation8 + $0x8c] ss:$16 sps:$4 sm:$0xff]  }
  0x2a   :  { %v4730_v14 = vld [vmem:[#allocation8 + $0x80] ss:$16 sps:$4 sm:$0xff]   ;;  %v4731_v15 = vld [vmem:[#allocation8 + $0x88] ss:$16 sps:$4 sm:$0xff]   ;;  %v4732_v16 = vld [vmem:[#allocation8 + $0x64] ss:$16 sps:$4 sm:$0xff]  }
  0x2b   :  { %482 = vmatpush1.bf16.msra.mxu0 %v4718_v6  ;;  %523 = vmatpush1.bf16.msra.mxu1 %v4719_v7  ;;  %v4734_v17 = vld [vmem:[#allocation8 + $0x6c] ss:$16 sps:$4 sm:$0xff]   ;;  %v4736_v18 = vld [vmem:[#allocation8 + $0x60] ss:$16 sps:$4 sm:$0xff]   ;;  %v4737_v19 = vld [vmem:[#allocation8 + $0x68] ss:$16 sps:$4 sm:$0xff]  }
  0x2c   :  { %483 = vmatprep.subr.bf16.mxu0 %v4720_v8  ;;  %524 = vmatprep.subr.bf16.mxu1 %v4722_v9  ;;  %v4738_v20 = vld [vmem:[#allocation8 + $0x44] ss:$16 sps:$4 sm:$0xff]   ;;  %v4740_v21 = vld [vmem:[#allocation8 + $0x4c] ss:$16 sps:$4 sm:$0xff]   ;;  %v4742_v22 = vld [vmem:[#allocation8 + $0x40] ss:$16 sps:$4 sm:$0xff]  }
  0x2d   :  { %v4743_v23 = vld [vmem:[#allocation8 + $0x48] ss:$16 sps:$4 sm:$0xff]   ;;  %v4744_v24 = vld [vmem:[#allocation8 + $0x24] ss:$16 sps:$4 sm:$0xff]   ;;  %v4746_v25 = vld [vmem:[#allocation8 + $0x2c] ss:$16 sps:$4 sm:$0xff]  }
  0x2e   :  { %v4748_v26 = vld [vmem:[#allocation8 + $0x20] ss:$16 sps:$4 sm:$0xff]   ;;  %v4749_v27 = vld [vmem:[#allocation8 + $0x28] ss:$16 sps:$4 sm:$0xff]   ;;  %v4750_v28 = vld [vmem:[#allocation8 + $0x4] ss:$16 sps:$4 sm:$0xff]  }
  0x2f   :  { %484 = vmatpush1.bf16.msra.mxu0 %v4724_v10  ;;  %525 = vmatpush1.bf16.msra.mxu1 %v4725_v11  ;;  %v4752_v29 = vld [vmem:[#allocation8 + $0xc] ss:$16 sps:$4 sm:$0xff]   ;;  %v4754_v30 = vld [vmem:[#allocation8] ss:$16 sps:$4 sm:$0xff]   ;;  %v4755_v31 = vld [vmem:[#allocation8 + $0x8] ss:$16 sps:$4 sm:$0xff]  }
  0x30   :  { %485 = vmatprep.subr.bf16.mxu0 %v4726_v12  ;;  %526 = vmatprep.subr.bf16.mxu1 %v4728_v13  ;;  %v4756_v32 = vld [vmem:[#allocation8 + $0x1e4] ss:$16 sps:$4 sm:$0xff]   ;;  %v4758_v33 = vld [vmem:[#allocation8 + $0x1ec] ss:$16 sps:$4 sm:$0xff]   ;;  %v4760_v34 = vld [vmem:[#allocation8 + $0x1e0] ss:$16 sps:$4 sm:$0xff]  }
  0x31   :  { %v4761_v35 = vld [vmem:[#allocation8 + $0x1e8] ss:$16 sps:$4 sm:$0xff]   ;;  %v4762_v36 = vld [vmem:[#allocation8 + $0x1c4] ss:$16 sps:$4 sm:$0xff]   ;;  %v4764_v37 = vld [vmem:[#allocation8 + $0x1cc] ss:$16 sps:$4 sm:$0xff]  }
  0x32   :  { %v4766_v38 = vld [vmem:[#allocation8 + $0x1c0] ss:$16 sps:$4 sm:$0xff]   ;;  %v4767_v39 = vld [vmem:[#allocation8 + $0x1c8] ss:$16 sps:$4 sm:$0xff]   ;;  %v4768_v40 = vld [vmem:[#allocation8 + $0x1a4] ss:$16 sps:$4 sm:$0xff]  }
  0x33   :  { %486 = vmatpush1.bf16.msra.mxu0 %v4730_v14  ;;  %527 = vmatpush1.bf16.msra.mxu1 %v4731_v15  ;;  %v4770_v41 = vld [vmem:[#allocation8 + $0x1ac] ss:$16 sps:$4 sm:$0xff]   ;;  %v4772_v42 = vld [vmem:[#allocation8 + $0x1a0] ss:$16 sps:$4 sm:$0xff]   ;;  %v4773_v43 = vld [vmem:[#allocation8 + $0x1a8] ss:$16 sps:$4 sm:$0xff]  }
  0x34   :  { %487 = vmatprep.subr.bf16.mxu0 %v4732_v16  ;;  %528 = vmatprep.subr.bf16.mxu1 %v4734_v17  ;;  %v4774_v44 = vld [vmem:[#allocation8 + $0x184] ss:$16 sps:$4 sm:$0xff]   ;;  %v4776_v45 = vld [vmem:[#allocation8 + $0x18c] ss:$16 sps:$4 sm:$0xff]   ;;  %v4778_v48 = vld [vmem:[#allocation8 + $0x180] ss:$16 sps:$4 sm:$0xff]  }
  0x35   :  { %v92_v46 = vld [vmem:[#allocation6 + $0x8] sm:$0xff]  ;;  %v4780_v50 = vld [vmem:[#allocation8 + $0x164] ss:$16 sps:$4 sm:$0xff]   ;;  %v4784_v52 = vld [vmem:[#allocation8 + $0x160] ss:$16 sps:$4 sm:$0xff]   ;;  %s5549_s0 = smov [#allocation2]  }
  0x36   :  { %v94_v47 = vpack.c.bf16 %v92_v46, %v92_v46  ;;  %v4779_v49 = vld [vmem:[#allocation8 + $0x188] ss:$16 sps:$4 sm:$0xff]   ;;  %v4782_v51 = vld [vmem:[#allocation8 + $0x16c] ss:$16 sps:$4 sm:$0xff]   ;;  %v4786_v54 = vld [vmem:[#allocation8 + $0x144] ss:$16 sps:$4 sm:$0xff]  }
  0x37   :  { %488 = vmatpush1.bf16.msra.mxu0 %v4736_v18  ;;  %529 = vmatpush1.bf16.msra.mxu1 %v4737_v19  ;;  %v4785_v53 = vld [vmem:[#allocation8 + $0x168] ss:$16 sps:$4 sm:$0xff]   ;;  %v4788_v55 = vld [vmem:[#allocation8 + $0x14c] ss:$16 sps:$4 sm:$0xff]   ;;  %v4790_v56 = vld [vmem:[#allocation8 + $0x140] ss:$16 sps:$4 sm:$0xff]  }
  0x38   :  { %489 = vmatprep.subr.bf16.mxu0 %v4738_v20  ;;  %530 = vmatprep.subr.bf16.mxu1 %v4740_v21  ;;  %v4791_v57 = vld [vmem:[#allocation8 + $0x148] ss:$16 sps:$4 sm:$0xff]   ;;  %v4792_v58 = vld [vmem:[#allocation8 + $0x124] ss:$16 sps:$4 sm:$0xff]   ;;  %v4794_v59 = vld [vmem:[#allocation8 + $0x12c] ss:$16 sps:$4 sm:$0xff]  }
  0x39   :  { %511 = vmatprep.mubr.bf16.mxu0 %v94_v47  ;;  %552 = vmatprep.mubr.bf16.mxu1 %v94_v47  ;;  %v4796_v60 = vld [vmem:[#allocation8 + $0x120] ss:$16 sps:$4 sm:$0xff]   ;;  %v4797_v61 = vld [vmem:[#allocation8 + $0x128] ss:$16 sps:$4 sm:$0xff]   ;;  %v4798_v62 = vld [vmem:[#allocation8 + $0x104] ss:$16 sps:$4 sm:$0xff]  }
  0x3a   :  { %v4800_v63 = vld [vmem:[#allocation8 + $0x10c] ss:$16 sps:$4 sm:$0xff]   ;;  %v4802_v0 = vld [vmem:[#allocation8 + $0x100] ss:$16 sps:$4 sm:$0xff]   ;;  %v4803_v1 = vld [vmem:[#allocation8 + $0x108] ss:$16 sps:$4 sm:$0xff]  }
  0x3b   :  { %490 = vmatpush1.bf16.msra.mxu0 %v4742_v22  ;;  %531 = vmatpush1.bf16.msra.mxu1 %v4743_v23  ;;  %v91_v2 = vld [vmem:[#allocation6] sm:$0xff]  ;;  %s63_s5 = sshll.u32 %s5549_s0, 4  ;;  %s5550_s15 = smov [#allocation3]   ;;  %s64_s5 = int_to_ptr.vmem [resolvable:$true] %s63_s5 }
  0x3c   :  { %491 = vmatprep.subr.bf16.mxu0 %v4744_v24  ;;  %532 = vmatprep.subr.bf16.mxu1 %v4746_v25  ;;  %v93_v3 = vpack.c.bf16 %v91_v2, %v91_v2  ;;  %s75_s16 = sshll.u32 %s5550_s15, 4  ;;  %s5480_s17 = scalar_lea.vmem %s64_s5, 16384  ;;  %s76_s16 = int_to_ptr.vmem [resolvable:$true] %s75_s16 }
  0x3d   :  { %p5481_p1 = scmp.ne.s32.totalorder %s64_s5, %s5480_s17  ;;  %p5485_p2 = scmp.lt.s32.totalorder %s64_s5, %s64_s5 }
  0x3e   :  { %p5486_p3 = scmp.lt.s32.totalorder %s5480_s17, %s5480_s17 }
  0x3f   :  { %492 = vmatpush1.bf16.msra.mxu0 %v4748_v26  ;;  %533 = vmatpush1.bf16.msra.mxu1 %v4749_v27 }
  0x40   :  { %493 = vmatprep.subr.bf16.mxu0 %v4750_v28  ;;  %534 = vmatprep.subr.bf16.mxu1 %v4752_v29  ;;  %p5487_p4 = por %p5486_p3, %p5485_p2 }
  0x42   :  { %p5488_p5 = pnand %p5487_p4, %p5481_p1 }
  0x43   :  { %494 = vmatpush1.bf16.msra.mxu0 %v4754_v30  ;;  %535 = vmatpush1.bf16.msra.mxu1 %v4755_v31 }
  0x44   :  { %495 = vmatprep.subr.bf16.mxu0 %v4756_v32  ;;  %536 = vmatprep.subr.bf16.mxu1 %v4758_v33 }
  0x47   :  { %496 = vmatpush2.bf16.msra.mxu0 %v4760_v34  ;;  %537 = vmatpush2.bf16.msra.mxu1 %v4761_v35 }
  0x48   :  { %497 = vmatprep.subr.bf16.mxu0 %v4762_v36  ;;  %538 = vmatprep.subr.bf16.mxu1 %v4764_v37 }
  0x4b   :  { %498 = vmatpush2.bf16.msra.mxu0 %v4766_v38  ;;  %539 = vmatpush2.bf16.msra.mxu1 %v4767_v39 }
  0x4c   :  { %499 = vmatprep.subr.bf16.mxu0 %v4768_v40  ;;  %540 = vmatprep.subr.bf16.mxu1 %v4770_v41 }
  0x4f   :  { %500 = vmatpush2.bf16.msra.mxu0 %v4772_v42  ;;  %541 = vmatpush2.bf16.msra.mxu1 %v4773_v43 }
  0x50   :  { %501 = vmatprep.subr.bf16.mxu0 %v4774_v44  ;;  %542 = vmatprep.subr.bf16.mxu1 %v4776_v45 }
  0x53   :  { %502 = vmatpush2.bf16.msra.mxu0 %v4778_v48  ;;  %543 = vmatpush2.bf16.msra.mxu1 %v4779_v49 }
  0x54   :  { %503 = vmatprep.subr.bf16.mxu0 %v4780_v50  ;;  %544 = vmatprep.subr.bf16.mxu1 %v4782_v51 }
  0x57   :  { %504 = vmatpush2.bf16.msra.mxu0 %v4784_v52  ;;  %545 = vmatpush2.bf16.msra.mxu1 %v4785_v53 }
  0x58   :  { %505 = vmatprep.subr.bf16.mxu0 %v4786_v54  ;;  %546 = vmatprep.subr.bf16.mxu1 %v4788_v55 }
  0x5b   :  { %506 = vmatpush2.bf16.msra.mxu0 %v4790_v56  ;;  %547 = vmatpush2.bf16.msra.mxu1 %v4791_v57 }
  0x5c   :  { %507 = vmatprep.subr.bf16.mxu0 %v4792_v58  ;;  %548 = vmatprep.subr.bf16.mxu1 %v4794_v59 }
  0x5f   :  { %508 = vmatpush2.bf16.msra.mxu0 %v4796_v60  ;;  %549 = vmatpush2.bf16.msra.mxu1 %v4797_v61 }
  0x60   :  { %509 = vmatprep.subr.bf16.mxu0 %v4798_v62  ;;  %550 = vmatprep.subr.bf16.mxu1 %v4800_v63 }
  0x63   :  { %510 = vmatpush2.bf16.msra.mxu0 %v4802_v0  ;;  %551 = vmatpush2.bf16.msra.mxu1 %v4803_v1 }
  0x66   :  { %512 = vmatmul.mubr.bf16.vlgmr.msra.gmra.mxu0 %v93_v3  ;;  %553 = vmatmul.mubr.bf16.vlgmr.msra.gmra.mxu1 %v93_v3 }
  0x67   :  { %5491 = shalt.err (!%p5488_p5)  }
  0x68   :  { %66 = dma.hbm_to_vmem [thread:$0]  %s5864_s2, 16384, %s64_s5, [#allocation5] }
  0x69   :  { %s5500_s20 = scalar_lea.vmem %s76_s16, 16384  ;;  %p5505_p7 = scmp.lt.s32.totalorder %s76_s16, %s76_s16 }
  0x6a   :  { %p5501_p6 = scmp.ne.s32.totalorder %s76_s16, %s5500_s20  ;;  %p5506_p8 = scmp.lt.s32.totalorder %s5500_s20, %s5500_s20 }
  0x6c   :  { %p5507_p9 = por %p5506_p8, %p5505_p7 }
  0x6e   :  { %p5508_p10 = pnand %p5507_p9, %p5501_p6 }
  0x70   :  { %5511 = shalt.err (!%p5508_p10)  }
  0x71   :  { %78 = dma.hbm_to_vmem [thread:$0]  %s5865_s3, 16384, %s76_s16, [#allocation5 + $0x1] }
  0x72   :  { %s5551_s23 = smov [#allocation4]  }
  0x73   :  { %s87_s24 = sshll.u32 %s5551_s23, 4  ;;  %s88_s24 = int_to_ptr.vmem [resolvable:$true] %s87_s24 }
  0x74   :  { %s5520_s25 = scalar_lea.vmem %s88_s24, 16384  ;;  %p5525_p12 = scmp.lt.s32.totalorder %s88_s24, %s88_s24 }
  0x75   :  { %p5521_p11 = scmp.ne.s32.totalorder %s88_s24, %s5520_s25  ;;  %p5526_p13 = scmp.lt.s32.totalorder %s5520_s25, %s5520_s25 }
  0x77   :  { %p5527_p0 = por %p5526_p13, %p5525_p12 }
  0x79   :  { %p5528_p1 = pnand %p5527_p0, %p5521_p11 }
  0x7b   :  { %5531 = shalt.err (!%p5528_p1)  }
  0x7c   :  { %90 = dma.hbm_to_vmem [thread:$0]  %s5866_s4, 16384, %s88_s24, [#allocation5 + $0x2] }
 0x126   :  { %v5606_v4 = vpop.f32.mrf.mxu0  ;;  %v5608_v5 = vpop.f32.mrf.mxu1 }
 0x127   :  { %v561_v6 = vrot.slane %v5606_v4, 4  ;;  %v585_v7 = vmul.f32 %v5606_v4, %v5606_v4  ;;  %v573_v8 = vrot.slane %v5608_v5, 4  ;;  %v587_v9 = vmul.f32 %v5608_v5, %v5608_v5 }
 0x128   :  { %v5616_v10 = vpop.f32.mrf.mxu0  ;;  %v5618_v11 = vpop.f32.mrf.mxu1 }
 0x129   :  { %v562_v12 = vadd.f32 %v561_v6, %v5606_v4  ;;  %v589_v13 = vrot.slane %v585_v7, 4  ;;  %v574_v14 = vadd.f32 %v573_v8, %v5608_v5  ;;  %v601_v15 = vrot.slane %v587_v9, 4 }
 0x12a   :  { %v567_v16 = vrot.slane %v5616_v10, 4  ;;  %v586_v17 = vmul.f32 %v5616_v10, %v5616_v10  ;;  %v579_v18 = vrot.slane %v5618_v11, 4  ;;  %v588_v19 = vmul.f32 %v5618_v11, %v5618_v11  ;;  %v517_v20 = vpop.f32.mrf.mxu0  ;;  %v558_v21 = vpop.f32.mrf.mxu1 }
 0x12b   :  { %v563_v22 = vrot.slane %v562_v12, 2  ;;  %v590_v23 = vadd.f32 %v589_v13, %v585_v7  ;;  %v575_v24 = vrot.slane %v574_v14, 2  ;;  %v602_v25 = vadd.f32 %v601_v15, %v587_v9 }
 0x12c   :  { %v568_v26 = vadd.f32 %v567_v16, %v5616_v10  ;;  %v595_v27 = vrot.slane %v586_v17, 4  ;;  %v580_v28 = vadd.f32 %v579_v18, %v5618_v11  ;;  %v607_v29 = vrot.slane %v588_v19, 4  ;;  %v518_v30 = vpop.f32.mrf.mxu0  ;;  %v559_v31 = vpop.f32.mrf.mxu1 }
 0x12d   :  { %v564_v32 = vadd.f32 %v563_v22, %v562_v12  ;;  %v591_v33 = vrot.slane %v590_v23, 2  ;;  %v576_v34 = vadd.f32 %v575_v24, %v574_v14  ;;  %v603_v35 = vrot.slane %v602_v25, 2 }
 0x12e   :  { %v569_v36 = vrot.slane %v568_v26, 2  ;;  %v596_v37 = vadd.f32 %v595_v27, %v586_v17  ;;  %v581_v38 = vrot.slane %v580_v28, 2  ;;  %v608_v39 = vadd.f32 %v607_v29, %v588_v19 }
 0x12f   :  { %v565_v40 = vrot.slane %v564_v32, 1  ;;  %v592_v41 = vadd.f32 %v591_v33, %v590_v23  ;;  %v577_v42 = vrot.slane %v576_v34, 1  ;;  %v604_v43 = vadd.f32 %v603_v35, %v602_v25 }
 0x130   :  { %v570_v44 = vadd.f32 %v569_v36, %v568_v26  ;;  %v597_v45 = vrot.slane %v596_v37, 2  ;;  %v582_v46 = vadd.f32 %v581_v38, %v580_v28  ;;  %v609_v47 = vrot.slane %v608_v39, 2 }
 0x131   :  { %v566_v48 = vadd.f32 %v565_v40, %v564_v32  ;;  %v593_v49 = vrot.slane %v592_v41, 1  ;;  %v578_v50 = vadd.f32 %v577_v42, %v576_v34  ;;  %v605_v51 = vrot.slane %v604_v43, 1 }
 0x132   :  { %v571_v52 = vrot.slane %v570_v44, 1  ;;  %v598_v53 = vadd.f32 %v597_v45, %v596_v37  ;;  %v583_v54 = vrot.slane %v582_v46, 1  ;;  %v610_v55 = vadd.f32 %v609_v47, %v608_v39 }
 0x133   :  { %v594_v56 = vadd.f32 %v593_v49, %v592_v41  ;;  %v613_v57 = vmul.f32 0.125, %v566_v48  ;;  %v606_v58 = vadd.f32 %v605_v51, %v604_v43  ;;  %v615_v59 = vmul.f32 0.125, %v578_v50  ;;  %v633_v43 = vld [vmem:[#allocation10] ss:$8 sm:$0xf] }
 0x134   :  { %v572_v60 = vadd.f32 %v571_v52, %v570_v44  ;;  %v599_v61 = vrot.slane %v598_v53, 1  ;;  %v584_v62 = vadd.f32 %v583_v54, %v582_v46  ;;  %v611_v63 = vrot.slane %v610_v55, 1 }
 0x135   :  { %v617_v0 = vmul.f32 0.125, %v594_v56  ;;  %v621_v1 = vmul.f32 %v613_v57, %v613_v57  ;;  %v619_v2 = vmul.f32 0.125, %v606_v58  ;;  %v623_v3 = vmul.f32 %v615_v59, %v615_v59 }
 0x136   :  { %v600_v6 = vadd.f32 %v599_v61, %v598_v53  ;;  %v614_v7 = vmul.f32 0.125, %v572_v60  ;;  %v612_v8 = vadd.f32 %v611_v63, %v610_v55  ;;  %v616_v9 = vmul.f32 0.125, %v584_v62 }
 0x137   :  { %v625_v12 = vsub.f32 %v617_v0, %v621_v1  ;;  %v627_v13 = vsub.f32 %v619_v2, %v623_v3  ;;  %v5552_v28 = vmov 1966171168   ;;  %v653_v30 = vlaneseq  ;;  %v635_v1 = vld [vmem:[#allocation10 + $0x1] ss:$8 sm:$0xf] }
 0x138   :  { %v618_v14 = vmul.f32 0.125, %v600_v6  ;;  %v622_v15 = vmul.f32 %v614_v7, %v614_v7  ;;  %v620_v16 = vmul.f32 0.125, %v612_v8  ;;  %v624_v17 = vmul.f32 %v616_v9, %v616_v9 }
 0x139   :  { %v629_v18 = vmax.f32 %v625_v12, 0.0  ;;  %v631_v19 = vmax.f32 %v627_v13, 0.0  ;;  %v651_v29 = vunpack.c.l.s4 %v5552_v28  ;;  %v654_v32 = vshrl.u32 %v653_v30, 7 }
 0x13a   :  { %v626_v20 = vsub.f32 %v618_v14, %v622_v15  ;;  %v628_v21 = vsub.f32 %v620_v16, %v624_v17 }
 0x13b   :  { %v636_v22 = vadd.f32 1e-05, %v629_v18  ;;  %v638_v23 = vadd.f32 1e-05, %v631_v19  ;;  %v652_v31 = vunpack.c.0.s8 %v651_v29  ;;  %v5634_v44 = vsub.s32 0, %v654_v32 }
 0x13c   :  { %v630_v24 = vmax.f32 %v626_v20, 0.0  ;;  %v632_v25 = vmax.f32 %v628_v21, 0.0  ;;  %v5637_v46 = vsub.s32 1, %v654_v32  ;;  %v5639_v47 = vsub.s32 2, %v654_v32 }
 0x13d   :  { %4804 = vrsqrt.f32 %v636_v22  ;;  %v5630_v35 = vsub.s32 %v652_v31, %v654_v32  ;;  %v5641_v48 = vsub.s32 3, %v654_v32 }
 0x13e   :  { %v637_v26 = vadd.f32 1e-05, %v630_v24  ;;  %v639_v27 = vadd.f32 1e-05, %v632_v25  ;;  %4806 = vrsqrt.f32 %v638_v23 }
 0x140   :  { %4808 = vrsqrt.f32 %v637_v26 }
 0x141   :  { %4810 = vrsqrt.f32 %v639_v27 }
 0x14a   :  { %v4805_v33 = vpop.eup %4804 }
 0x14b   :  { %v4807_v34 = vpop.eup %4806 }
 0x14d   :  { %v4809_v36 = vpop.eup %4808 }
 0x14e   :  { %v4811_v37 = vpop.eup %4810  ;;  %v648_v38 = vcombine.low %v4805_v33, %v4809_v36 }
 0x14f   :  { %v649_v39 = vcombine.low %v4807_v34, %v4811_v37 }
 0x150   :  { %v656_v40 = vrot.slane %v648_v38, %v5630_v35 }
 0x151   :  { %v663_v41 = vrot.slane %v649_v39, %v5630_v35 }
 0x153   :  { %v664_v42 = vcombine.low %v656_v40, %v663_v41 }
 0x155   :  { %v671_v45 = vrot.slane %v664_v42, %v5630_v35 }
 0x157   :  { %v673_v49 = vmul.f32 %v671_v45, %v633_v43 }
 0x159   :  { %v678_v50 = vrot.slane %v673_v49, %v5634_v44  ;;  %v682_v51 = vrot.slane %v673_v49, %v5637_v46  ;;  %v686_v52 = vrot.slane %v673_v49, %v5639_v47  ;;  %v690_v53 = vrot.slane %v673_v49, %v5641_v48 }
 0x15b   :  { %v695_v54 = vmul.f32 %v678_v50, %v613_v57  ;;  %v696_v55 = vmul.f32 %v682_v51, %v614_v7  ;;  %v697_v56 = vmul.f32 %v686_v52, %v615_v59  ;;  %v698_v58 = vmul.f32 %v690_v53, %v616_v9 }
 0x15c   :  { %v729_v6 = vmul.f32 %v678_v50, %v5606_v4  ;;  %v730_v8 = vmul.f32 %v682_v51, %v5616_v10  ;;  %v731_v57 = vmul.f32 %v686_v52, %v5608_v5  ;;  %v732_v59 = vmul.f32 %v690_v53, %v5618_v11 }
 0x15d   :  { %v703_v60 = vcombine.low %v695_v54, %v696_v55  ;;  %v704_v61 = vcombine.low %v697_v56, %v698_v58 }
 0x15f   :  { %v711_v62 = vrot.slane %v703_v60, %v5630_v35  ;;  %v718_v63 = vrot.slane %v704_v61, %v5630_v35 }
 0x161   :  { %v719_v0 = vcombine.low %v711_v62, %v718_v63 }
 0x163   :  { %v726_v2 = vrot.slane %v719_v0, %v5630_v35 }
 0x165   :  { %v728_v3 = vsub.f32 %v635_v1, %v726_v2 }
 0x167   :  { %v737_v7 = vrot.slane %v728_v3, %v5634_v44  ;;  %v741_v9 = vrot.slane %v728_v3, %v5637_v46  ;;  %v745_v12 = vrot.slane %v728_v3, %v5639_v47  ;;  %v749_v13 = vrot.slane %v728_v3, %v5641_v48 }
 0x169   :  { %v754_v14 = vadd.f32 %v737_v7, %v729_v6  ;;  %v755_v15 = vadd.f32 %v741_v9, %v730_v8  ;;  %v756_v16 = vadd.f32 %v745_v12, %v731_v57  ;;  %v757_v17 = vadd.f32 %v749_v13, %v732_v59 }
 0x16b   :  { %v758_v18 = vmax.f32 %v754_v14, 0.0  ;;  %v759_v4 = vmax.f32 %v755_v15, 0.0  ;;  %v760_v19 = vmax.f32 %v756_v16, 0.0  ;;  %v761_v10 = vmax.f32 %v757_v17, 0.0 }
 0x16d   :  { %v5658_v20 = vpack.c.bf16 %v758_v18, %v758_v18  ;;  %v5660_v5 = vpack.c.bf16 %v759_v4, %v759_v4  ;;  %v5662_v11 = vpack.c.bf16 %v760_v19, %v760_v19  ;;  %v5664_v21 = vpack.c.bf16 %v761_v10, %v761_v10 }
 0x16e   :  { %5536 = dma.done.wait [#allocation5], 16384 }
 0x16f   :  { %5537 = vsyncadd [#allocation5], 4294950912  ;;  %1570 = vmatprep.mubr.bf16.mxu0 %v5660_v5  ;;  %1611 = vmatprep.mubr.bf16.mxu1 %v5664_v21  ;;  %v4812_v22 = vld [vmem:[#allocation2 + $0xe4] ss:$16 sps:$4 sm:$0xff]   ;;  %v4816_v24 = vld [vmem:[#allocation2 + $0xe0] ss:$16 sps:$4 sm:$0xff]  }
 0x170   :  { %v4814_v23 = vld [vmem:[#allocation2 + $0x2e4] ss:$16 sps:$4 sm:$0xff]   ;;  %1538 = vmatprep.subr.bf16.mxu0 %v4812_v22  ;;  %v4817_v25 = vld [vmem:[#allocation2 + $0x2e0] ss:$16 sps:$4 sm:$0xff]  }
 0x171   :  { %1579 = vmatprep.subr.bf16.mxu1 %v4814_v23  ;;  %v4818_v26 = vld [vmem:[#allocation2 + $0xc4] ss:$16 sps:$4 sm:$0xff]   ;;  %1539 = vmatpush1.bf16.msra.mxu0 %v4816_v24  ;;  %v4822_v28 = vld [vmem:[#allocation2 + $0xc0] ss:$16 sps:$4 sm:$0xff]  }
 0x172   :  { %1580 = vmatpush1.bf16.msra.mxu1 %v4817_v25  ;;  %v4820_v27 = vld [vmem:[#allocation2 + $0x2c4] ss:$16 sps:$4 sm:$0xff]   ;;  %1540 = vmatprep.subr.bf16.mxu0 %v4818_v26  ;;  %v4823_v29 = vld [vmem:[#allocation2 + $0x2c0] ss:$16 sps:$4 sm:$0xff]  }
 0x173   :  { %1581 = vmatprep.subr.bf16.mxu1 %v4820_v27  ;;  %v4824_v30 = vld [vmem:[#allocation2 + $0xa4] ss:$16 sps:$4 sm:$0xff]   ;;  %v4828_v32 = vld [vmem:[#allocation2 + $0xa0] ss:$16 sps:$4 sm:$0xff]  }
 0x174   :  { %v4826_v31 = vld [vmem:[#allocation2 + $0x2a4] ss:$16 sps:$4 sm:$0xff]   ;;  %v4829_v33 = vld [vmem:[#allocation2 + $0x2a0] ss:$16 sps:$4 sm:$0xff]  }
 0x175   :  { %1541 = vmatpush1.bf16.msra.mxu0 %v4822_v28  ;;  %v4830_v34 = vld [vmem:[#allocation2 + $0x84] ss:$16 sps:$4 sm:$0xff]   ;;  %v4834_v37 = vld [vmem:[#allocation2 + $0x80] ss:$16 sps:$4 sm:$0xff]  }
 0x176   :  { %1582 = vmatpush1.bf16.msra.mxu1 %v4823_v29  ;;  %1542 = vmatprep.subr.bf16.mxu0 %v4824_v30  ;;  %v4832_v36 = vld [vmem:[#allocation2 + $0x284] ss:$16 sps:$4 sm:$0xff]   ;;  %v4835_v38 = vld [vmem:[#allocation2 + $0x280] ss:$16 sps:$4 sm:$0xff]  }
 0x177   :  { %1583 = vmatprep.subr.bf16.mxu1 %v4826_v31  ;;  %v4836_v39 = vld [vmem:[#allocation2 + $0x64] ss:$16 sps:$4 sm:$0xff]   ;;  %v4840_v41 = vld [vmem:[#allocation2 + $0x60] ss:$16 sps:$4 sm:$0xff]   ;;  %v4910_v31 = vld [vmem:[#allocation2 + $0xec] ss:$16 sps:$4 sm:$0xff]  }
 0x178   :  { %v4838_v40 = vld [vmem:[#allocation2 + $0x264] ss:$16 sps:$4 sm:$0xff]   ;;  %v4841_v42 = vld [vmem:[#allocation2 + $0x260] ss:$16 sps:$4 sm:$0xff]  }
 0x179   :  { %1543 = vmatpush1.bf16.msra.mxu0 %v4828_v32  ;;  %v4842_v43 = vld [vmem:[#allocation2 + $0x44] ss:$16 sps:$4 sm:$0xff]   ;;  %v4846_v49 = vld [vmem:[#allocation2 + $0x40] ss:$16 sps:$4 sm:$0xff]   ;;  %v4913_v32 = vld [vmem:[#allocation2 + $0x2ec] ss:$16 sps:$4 sm:$0xff]  }
 0x17a   :  { %1584 = vmatpush1.bf16.msra.mxu1 %v4829_v33  ;;  %1544 = vmatprep.subr.bf16.mxu0 %v4830_v34  ;;  %v4844_v45 = vld [vmem:[#allocation2 + $0x244] ss:$16 sps:$4 sm:$0xff]   ;;  %v4847_v50 = vld [vmem:[#allocation2 + $0x240] ss:$16 sps:$4 sm:$0xff]   ;;  %v4908_v33 = vld [vmem:[#allocation2 + $0xe8] ss:$16 sps:$4 sm:$0xff]  }
 0x17b   :  { %1585 = vmatprep.subr.bf16.mxu1 %v4832_v36  ;;  %v4848_v51 = vld [vmem:[#allocation2 + $0x24] ss:$16 sps:$4 sm:$0xff]   ;;  %v4852_v53 = vld [vmem:[#allocation2 + $0x20] ss:$16 sps:$4 sm:$0xff]   ;;  %v4911_v34 = vld [vmem:[#allocation2 + $0x2e8] ss:$16 sps:$4 sm:$0xff]  }
 0x17c   :  { %v4850_v52 = vld [vmem:[#allocation2 + $0x224] ss:$16 sps:$4 sm:$0xff]   ;;  %v4853_v54 = vld [vmem:[#allocation2 + $0x220] ss:$16 sps:$4 sm:$0xff]   ;;  %v4916_v36 = vld [vmem:[#allocation2 + $0xcc] ss:$16 sps:$4 sm:$0xff]  }
 0x17d   :  { %1545 = vmatpush1.bf16.msra.mxu0 %v4834_v37  ;;  %v4854_v55 = vld [vmem:[#allocation2 + $0x4] ss:$16 sps:$4 sm:$0xff]   ;;  %v4858_v58 = vld [vmem:[#allocation2] ss:$16 sps:$4 sm:$0xff]   ;;  %v4919_v37 = vld [vmem:[#allocation2 + $0x2cc] ss:$16 sps:$4 sm:$0xff]  }
 0x17e   :  { %1586 = vmatpush1.bf16.msra.mxu1 %v4835_v38  ;;  %1546 = vmatprep.subr.bf16.mxu0 %v4836_v39  ;;  %v4856_v56 = vld [vmem:[#allocation2 + $0x204] ss:$16 sps:$4 sm:$0xff]   ;;  %v4859_v60 = vld [vmem:[#allocation2 + $0x200] ss:$16 sps:$4 sm:$0xff]   ;;  %v4914_v38 = vld [vmem:[#allocation2 + $0xc8] ss:$16 sps:$4 sm:$0xff]  }
 0x17f   :  { %1587 = vmatprep.subr.bf16.mxu1 %v4838_v40  ;;  %v4860_v61 = vld [vmem:[#allocation2 + $0x1e4] ss:$16 sps:$4 sm:$0xff]   ;;  %v4864_v63 = vld [vmem:[#allocation2 + $0x1e0] ss:$16 sps:$4 sm:$0xff]   ;;  %v4917_v39 = vld [vmem:[#allocation2 + $0x2c8] ss:$16 sps:$4 sm:$0xff]  }
 0x180   :  { %v4862_v62 = vld [vmem:[#allocation2 + $0x3e4] ss:$16 sps:$4 sm:$0xff]   ;;  %v4865_v0 = vld [vmem:[#allocation2 + $0x3e0] ss:$16 sps:$4 sm:$0xff]   ;;  %v4922_v40 = vld [vmem:[#allocation2 + $0xac] ss:$16 sps:$4 sm:$0xff]  }
 0x181   :  { %1547 = vmatpush1.bf16.msra.mxu0 %v4840_v41  ;;  %v4866_v1 = vld [vmem:[#allocation2 + $0x1c4] ss:$16 sps:$4 sm:$0xff]   ;;  %v4870_v3 = vld [vmem:[#allocation2 + $0x1c0] ss:$16 sps:$4 sm:$0xff]   ;;  %v4925_v41 = vld [vmem:[#allocation2 + $0x2ac] ss:$16 sps:$4 sm:$0xff]  }
 0x182   :  { %1588 = vmatpush1.bf16.msra.mxu1 %v4841_v42  ;;  %1548 = vmatprep.subr.bf16.mxu0 %v4842_v43  ;;  %v4868_v2 = vld [vmem:[#allocation2 + $0x3c4] ss:$16 sps:$4 sm:$0xff]   ;;  %v4871_v6 = vld [vmem:[#allocation2 + $0x3c0] ss:$16 sps:$4 sm:$0xff]   ;;  %v4920_v42 = vld [vmem:[#allocation2 + $0xa8] ss:$16 sps:$4 sm:$0xff]  }
 0x183   :  { %1589 = vmatprep.subr.bf16.mxu1 %v4844_v45  ;;  %v4872_v8 = vld [vmem:[#allocation2 + $0x1a4] ss:$16 sps:$4 sm:$0xff]   ;;  %v4876_v59 = vld [vmem:[#allocation2 + $0x1a0] ss:$16 sps:$4 sm:$0xff]   ;;  %v4923_v43 = vld [vmem:[#allocation2 + $0x2a8] ss:$16 sps:$4 sm:$0xff]  }
 0x184   :  { %v4874_v57 = vld [vmem:[#allocation2 + $0x3a4] ss:$16 sps:$4 sm:$0xff]   ;;  %v4877_v7 = vld [vmem:[#allocation2 + $0x3a0] ss:$16 sps:$4 sm:$0xff]   ;;  %v4928_v45 = vld [vmem:[#allocation2 + $0x8c] ss:$16 sps:$4 sm:$0xff]  }
 0x185   :  { %1549 = vmatpush1.bf16.msra.mxu0 %v4846_v49  ;;  %v4878_v9 = vld [vmem:[#allocation2 + $0x184] ss:$16 sps:$4 sm:$0xff]   ;;  %v4882_v13 = vld [vmem:[#allocation2 + $0x180] ss:$16 sps:$4 sm:$0xff]   ;;  %v4931_v49 = vld [vmem:[#allocation2 + $0x28c] ss:$16 sps:$4 sm:$0xff]  }
 0x186   :  { %1590 = vmatpush1.bf16.msra.mxu1 %v4847_v50  ;;  %1550 = vmatprep.subr.bf16.mxu0 %v4848_v51  ;;  %v4880_v12 = vld [vmem:[#allocation2 + $0x384] ss:$16 sps:$4 sm:$0xff]   ;;  %v4883_v14 = vld [vmem:[#allocation2 + $0x380] ss:$16 sps:$4 sm:$0xff]   ;;  %v4926_v50 = vld [vmem:[#allocation2 + $0x88] ss:$16 sps:$4 sm:$0xff]  }
 0x187   :  { %1591 = vmatprep.subr.bf16.mxu1 %v4850_v52  ;;  %v4884_v15 = vld [vmem:[#allocation2 + $0x164] ss:$16 sps:$4 sm:$0xff]   ;;  %v4888_v17 = vld [vmem:[#allocation2 + $0x160] ss:$16 sps:$4 sm:$0xff]   ;;  %v4929_v51 = vld [vmem:[#allocation2 + $0x288] ss:$16 sps:$4 sm:$0xff]  }
 0x188   :  { %v4886_v16 = vld [vmem:[#allocation2 + $0x364] ss:$16 sps:$4 sm:$0xff]   ;;  %v4889_v18 = vld [vmem:[#allocation2 + $0x360] ss:$16 sps:$4 sm:$0xff]   ;;  %v4934_v52 = vld [vmem:[#allocation2 + $0x6c] ss:$16 sps:$4 sm:$0xff]  }
 0x189   :  { %1551 = vmatpush1.bf16.msra.mxu0 %v4852_v53  ;;  %v4890_v4 = vld [vmem:[#allocation2 + $0x144] ss:$16 sps:$4 sm:$0xff]   ;;  %v4894_v10 = vld [vmem:[#allocation2 + $0x140] ss:$16 sps:$4 sm:$0xff]   ;;  %v4937_v53 = vld [vmem:[#allocation2 + $0x26c] ss:$16 sps:$4 sm:$0xff]  }
 0x18a   :  { %1592 = vmatpush1.bf16.msra.mxu1 %v4853_v54  ;;  %1552 = vmatprep.subr.bf16.mxu0 %v4854_v55  ;;  %v4892_v19 = vld [vmem:[#allocation2 + $0x344] ss:$16 sps:$4 sm:$0xff]   ;;  %v4895_v22 = vld [vmem:[#allocation2 + $0x340] ss:$16 sps:$4 sm:$0xff]   ;;  %v4932_v54 = vld [vmem:[#allocation2 + $0x68] ss:$16 sps:$4 sm:$0xff]  }
 0x18b   :  { %1593 = vmatprep.subr.bf16.mxu1 %v4856_v56  ;;  %v4896_v23 = vld [vmem:[#allocation2 + $0x124] ss:$16 sps:$4 sm:$0xff]   ;;  %v4900_v25 = vld [vmem:[#allocation2 + $0x120] ss:$16 sps:$4 sm:$0xff]   ;;  %v4943_v55 = vld [vmem:[#allocation2 + $0x24c] ss:$16 sps:$4 sm:$0xff]  }
 0x18c   :  { %v4898_v24 = vld [vmem:[#allocation2 + $0x324] ss:$16 sps:$4 sm:$0xff]   ;;  %v4901_v26 = vld [vmem:[#allocation2 + $0x320] ss:$16 sps:$4 sm:$0xff]   ;;  %v4938_v56 = vld [vmem:[#allocation2 + $0x48] ss:$16 sps:$4 sm:$0xff]  }
 0x18d   :  { %1553 = vmatpush1.bf16.msra.mxu0 %v4858_v58  ;;  %v4902_v27 = vld [vmem:[#allocation2 + $0x104] ss:$16 sps:$4 sm:$0xff]   ;;  %v4906_v29 = vld [vmem:[#allocation2 + $0x100] ss:$16 sps:$4 sm:$0xff]   ;;  %v4941_v58 = vld [vmem:[#allocation2 + $0x248] ss:$16 sps:$4 sm:$0xff]  }
 0x18e   :  { %1594 = vmatpush1.bf16.msra.mxu1 %v4859_v60  ;;  %1554 = vmatprep.subr.bf16.mxu0 %v4860_v61  ;;  %v4904_v28 = vld [vmem:[#allocation2 + $0x304] ss:$16 sps:$4 sm:$0xff]   ;;  %v4907_v30 = vld [vmem:[#allocation2 + $0x300] ss:$16 sps:$4 sm:$0xff]   ;;  %v4946_v60 = vld [vmem:[#allocation2 + $0x2c] ss:$16 sps:$4 sm:$0xff]  }
 0x18f   :  { %1595 = vmatprep.subr.bf16.mxu1 %v4862_v62  ;;  %v4949_v61 = vld [vmem:[#allocation2 + $0x22c] ss:$16 sps:$4 sm:$0xff]   ;;  %v4944_v62 = vld [vmem:[#allocation2 + $0x28] ss:$16 sps:$4 sm:$0xff]  }
 0x191   :  { %1555 = vmatpush2.bf16.msra.mxu0 %v4864_v63  ;;  %v4947_v63 = vld [vmem:[#allocation2 + $0x228] ss:$16 sps:$4 sm:$0xff]  }
 0x192   :  { %1596 = vmatpush2.bf16.msra.mxu1 %v4865_v0  ;;  %1556 = vmatprep.subr.bf16.mxu0 %v4866_v1  ;;  %v4952_v0 = vld [vmem:[#allocation2 + $0xc] ss:$16 sps:$4 sm:$0xff]  }
 0x193   :  { %1597 = vmatprep.subr.bf16.mxu1 %v4868_v2  ;;  %v4955_v1 = vld [vmem:[#allocation2 + $0x20c] ss:$16 sps:$4 sm:$0xff]   ;;  %v4950_v2 = vld [vmem:[#allocation2 + $0x8] ss:$16 sps:$4 sm:$0xff]  }
 0x195   :  { %1557 = vmatpush2.bf16.msra.mxu0 %v4870_v3  ;;  %v4953_v3 = vld [vmem:[#allocation2 + $0x208] ss:$16 sps:$4 sm:$0xff]  }
 0x196   :  { %1598 = vmatpush2.bf16.msra.mxu1 %v4871_v6  ;;  %1558 = vmatprep.subr.bf16.mxu0 %v4872_v8  ;;  %v4958_v6 = vld [vmem:[#allocation2 + $0x1ec] ss:$16 sps:$4 sm:$0xff]  }
 0x197   :  { %1599 = vmatprep.subr.bf16.mxu1 %v4874_v57  ;;  %v4961_v8 = vld [vmem:[#allocation2 + $0x3ec] ss:$16 sps:$4 sm:$0xff]   ;;  %v4956_v57 = vld [vmem:[#allocation2 + $0x1e8] ss:$16 sps:$4 sm:$0xff]  }
 0x199   :  { %1559 = vmatpush2.bf16.msra.mxu0 %v4876_v59  ;;  %v4959_v59 = vld [vmem:[#allocation2 + $0x3e8] ss:$16 sps:$4 sm:$0xff]  }
 0x19a   :  { %1600 = vmatpush2.bf16.msra.mxu1 %v4877_v7  ;;  %1560 = vmatprep.subr.bf16.mxu0 %v4878_v9  ;;  %v4964_v7 = vld [vmem:[#allocation2 + $0x1cc] ss:$16 sps:$4 sm:$0xff]  }
 0x19b   :  { %1601 = vmatprep.subr.bf16.mxu1 %v4880_v12  ;;  %v4967_v9 = vld [vmem:[#allocation2 + $0x3cc] ss:$16 sps:$4 sm:$0xff]   ;;  %v4962_v12 = vld [vmem:[#allocation2 + $0x1c8] ss:$16 sps:$4 sm:$0xff]  }
 0x19d   :  { %1561 = vmatpush2.bf16.msra.mxu0 %v4882_v13  ;;  %v4965_v13 = vld [vmem:[#allocation2 + $0x3c8] ss:$16 sps:$4 sm:$0xff]  }
 0x19e   :  { %1602 = vmatpush2.bf16.msra.mxu1 %v4883_v14  ;;  %1562 = vmatprep.subr.bf16.mxu0 %v4884_v15  ;;  %v4970_v14 = vld [vmem:[#allocation2 + $0x1ac] ss:$16 sps:$4 sm:$0xff]  }
 0x19f   :  { %1603 = vmatprep.subr.bf16.mxu1 %v4886_v16  ;;  %v4973_v15 = vld [vmem:[#allocation2 + $0x3ac] ss:$16 sps:$4 sm:$0xff]   ;;  %v4968_v16 = vld [vmem:[#allocation2 + $0x1a8] ss:$16 sps:$4 sm:$0xff]  }
 0x1a1   :  { %1563 = vmatpush2.bf16.msra.mxu0 %v4888_v17  ;;  %v4971_v17 = vld [vmem:[#allocation2 + $0x3a8] ss:$16 sps:$4 sm:$0xff]  }
 0x1a2   :  { %1604 = vmatpush2.bf16.msra.mxu1 %v4889_v18  ;;  %1564 = vmatprep.subr.bf16.mxu0 %v4890_v4  ;;  %v4976_v18 = vld [vmem:[#allocation2 + $0x18c] ss:$16 sps:$4 sm:$0xff]  }
 0x1a3   :  { %1605 = vmatprep.subr.bf16.mxu1 %v4892_v19  ;;  %v4979_v4 = vld [vmem:[#allocation2 + $0x38c] ss:$16 sps:$4 sm:$0xff]   ;;  %v4974_v19 = vld [vmem:[#allocation2 + $0x188] ss:$16 sps:$4 sm:$0xff]  }
 0x1a5   :  { %1565 = vmatpush2.bf16.msra.mxu0 %v4894_v10  ;;  %v4977_v10 = vld [vmem:[#allocation2 + $0x388] ss:$16 sps:$4 sm:$0xff]  }
 0x1a6   :  { %1606 = vmatpush2.bf16.msra.mxu1 %v4895_v22  ;;  %1566 = vmatprep.subr.bf16.mxu0 %v4896_v23  ;;  %v4982_v22 = vld [vmem:[#allocation2 + $0x16c] ss:$16 sps:$4 sm:$0xff]  }
 0x1a7   :  { %1607 = vmatprep.subr.bf16.mxu1 %v4898_v24  ;;  %v4985_v23 = vld [vmem:[#allocation2 + $0x36c] ss:$16 sps:$4 sm:$0xff]   ;;  %v4980_v24 = vld [vmem:[#allocation2 + $0x168] ss:$16 sps:$4 sm:$0xff]  }
 0x1a9   :  { %1567 = vmatpush2.bf16.msra.mxu0 %v4900_v25  ;;  %v4983_v25 = vld [vmem:[#allocation2 + $0x368] ss:$16 sps:$4 sm:$0xff]  }
 0x1aa   :  { %1608 = vmatpush2.bf16.msra.mxu1 %v4901_v26  ;;  %1568 = vmatprep.subr.bf16.mxu0 %v4902_v27  ;;  %v4988_v26 = vld [vmem:[#allocation2 + $0x14c] ss:$16 sps:$4 sm:$0xff]  }
 0x1ab   :  { %1609 = vmatprep.subr.bf16.mxu1 %v4904_v28  ;;  %v4991_v27 = vld [vmem:[#allocation2 + $0x34c] ss:$16 sps:$4 sm:$0xff]   ;;  %v4986_v28 = vld [vmem:[#allocation2 + $0x148] ss:$16 sps:$4 sm:$0xff]  }
 0x1ad   :  { %1569 = vmatpush2.bf16.msra.mxu0 %v4906_v29  ;;  %v4989_v29 = vld [vmem:[#allocation2 + $0x348] ss:$16 sps:$4 sm:$0xff]  }
 0x1ae   :  { %1610 = vmatpush2.bf16.msra.mxu1 %v4907_v30  ;;  %1620 = vmatprep.subr.bf16.mxu0 %v4910_v31  ;;  %v4994_v30 = vld [vmem:[#allocation2 + $0x12c] ss:$16 sps:$4 sm:$0xff]  }
 0x1af   :  { %1661 = vmatprep.subr.bf16.mxu1 %v4913_v32  ;;  %v4997_v31 = vld [vmem:[#allocation2 + $0x32c] ss:$16 sps:$4 sm:$0xff]   ;;  %v4992_v32 = vld [vmem:[#allocation2 + $0x128] ss:$16 sps:$4 sm:$0xff]  }
 0x1b0   :  { %1571 = vmatmul.mubr.bf16.vlgmr.msra.gmra.mxu0 %v5658_v20 }
 0x1b1   :  { %1612 = vmatmul.mubr.bf16.vlgmr.msra.gmra.mxu1 %v5662_v11  ;;  %1621 = vmatpush1.bf16.msra.mxu0 %v4908_v33  ;;  %v4995_v33 = vld [vmem:[#allocation2 + $0x328] ss:$16 sps:$4 sm:$0xff]  }
 0x1b2   :  { %1662 = vmatpush1.bf16.msra.mxu1 %v4911_v34  ;;  %1622 = vmatprep.subr.bf16.mxu0 %v4916_v36  ;;  %v5000_v34 = vld [vmem:[#allocation2 + $0x10c] ss:$16 sps:$4 sm:$0xff]  }
 0x1b3   :  { %1663 = vmatprep.subr.bf16.mxu1 %v4919_v37  ;;  %1652 = vmatprep.mubr.bf16.mxu0 %v5660_v5  ;;  %v4935_v5 = vld [vmem:[#allocation2 + $0x268] ss:$16 sps:$4 sm:$0xff]   ;;  %v5003_v36 = vld [vmem:[#allocation2 + $0x30c] ss:$16 sps:$4 sm:$0xff]  }
 0x1b4   :  { %1693 = vmatprep.mubr.bf16.mxu1 %v5664_v21  ;;  %v4940_v21 = vld [vmem:[#allocation2 + $0x4c] ss:$16 sps:$4 sm:$0xff]   ;;  %v4998_v37 = vld [vmem:[#allocation2 + $0x108] ss:$16 sps:$4 sm:$0xff]  }
 0x1b5   :  { %1623 = vmatpush1.bf16.msra.mxu0 %v4914_v38  ;;  %v5001_v38 = vld [vmem:[#allocation2 + $0x308] ss:$16 sps:$4 sm:$0xff]  }
 0x1b6   :  { %1664 = vmatpush1.bf16.msra.mxu1 %v4917_v39  ;;  %1624 = vmatprep.subr.bf16.mxu0 %v4922_v40 }
 0x1b7   :  { %1665 = vmatprep.subr.bf16.mxu1 %v4925_v41 }
 0x1b9   :  { %1625 = vmatpush1.bf16.msra.mxu0 %v4920_v42 }
 0x1ba   :  { %1666 = vmatpush1.bf16.msra.mxu1 %v4923_v43  ;;  %1626 = vmatprep.subr.bf16.mxu0 %v4928_v45 }
 0x1bb   :  { %1667 = vmatprep.subr.bf16.mxu1 %v4931_v49 }
 0x1bd   :  { %1627 = vmatpush1.bf16.msra.mxu0 %v4926_v50 }
 0x1be   :  { %1668 = vmatpush1.bf16.msra.mxu1 %v4929_v51  ;;  %1628 = vmatprep.subr.bf16.mxu0 %v4934_v52 }
 0x1bf   :  { %1669 = vmatprep.subr.bf16.mxu1 %v4937_v53 }
 0x1c1   :  { %1629 = vmatpush1.bf16.msra.mxu0 %v4932_v54 }
 0x1c2   :  { %1670 = vmatpush1.bf16.msra.mxu1 %v4935_v5  ;;  %1630 = vmatprep.subr.bf16.mxu0 %v4940_v21 }
 0x1c3   :  { %1671 = vmatprep.subr.bf16.mxu1 %v4943_v55 }
 0x1c5   :  { %1631 = vmatpush1.bf16.msra.mxu0 %v4938_v56 }
 0x1c6   :  { %1672 = vmatpush1.bf16.msra.mxu1 %v4941_v58  ;;  %1632 = vmatprep.subr.bf16.mxu0 %v4946_v60 }
 0x1c7   :  { %1673 = vmatprep.subr.bf16.mxu1 %v4949_v61 }
 0x1c9   :  { %1633 = vmatpush1.bf16.msra.mxu0 %v4944_v62 }
 0x1ca   :  { %1674 = vmatpush1.bf16.msra.mxu1 %v4947_v63  ;;  %1634 = vmatprep.subr.bf16.mxu0 %v4952_v0 }
 0x1cb   :  { %1675 = vmatprep.subr.bf16.mxu1 %v4955_v1 }
 0x1cd   :  { %1635 = vmatpush1.bf16.msra.mxu0 %v4950_v2 }
 0x1ce   :  { %1676 = vmatpush1.bf16.msra.mxu1 %v4953_v3  ;;  %1636 = vmatprep.subr.bf16.mxu0 %v4958_v6 }
 0x1cf   :  { %1677 = vmatprep.subr.bf16.mxu1 %v4961_v8 }
 0x1d1   :  { %1637 = vmatpush2.bf16.msra.mxu0 %v4956_v57 }
 0x1d2   :  { %1678 = vmatpush2.bf16.msra.mxu1 %v4959_v59  ;;  %1638 = vmatprep.subr.bf16.mxu0 %v4964_v7 }
 0x1d3   :  { %1679 = vmatprep.subr.bf16.mxu1 %v4967_v9 }
 0x1d5   :  { %1639 = vmatpush2.bf16.msra.mxu0 %v4962_v12 }
 0x1d6   :  { %1680 = vmatpush2.bf16.msra.mxu1 %v4965_v13  ;;  %1640 = vmatprep.subr.bf16.mxu0 %v4970_v14 }
 0x1d7   :  { %1681 = vmatprep.subr.bf16.mxu1 %v4973_v15 }
 0x1d9   :  { %1641 = vmatpush2.bf16.msra.mxu0 %v4968_v16 }
 0x1da   :  { %1682 = vmatpush2.bf16.msra.mxu1 %v4971_v17  ;;  %1642 = vmatprep.subr.bf16.mxu0 %v4976_v18 }
 0x1db   :  { %1683 = vmatprep.subr.bf16.mxu1 %v4979_v4 }
 0x1dd   :  { %1643 = vmatpush2.bf16.msra.mxu0 %v4974_v19 }
 0x1de   :  { %1684 = vmatpush2.bf16.msra.mxu1 %v4977_v10  ;;  %1644 = vmatprep.subr.bf16.mxu0 %v4982_v22 }
 0x1df   :  { %1685 = vmatprep.subr.bf16.mxu1 %v4985_v23 }
 0x1e1   :  { %1645 = vmatpush2.bf16.msra.mxu0 %v4980_v24 }
 0x1e2   :  { %1686 = vmatpush2.bf16.msra.mxu1 %v4983_v25  ;;  %1646 = vmatprep.subr.bf16.mxu0 %v4988_v26 }
 0x1e3   :  { %1687 = vmatprep.subr.bf16.mxu1 %v4991_v27 }
 0x1e5   :  { %1647 = vmatpush2.bf16.msra.mxu0 %v4986_v28 }
 0x1e6   :  { %1688 = vmatpush2.bf16.msra.mxu1 %v4989_v29  ;;  %1648 = vmatprep.subr.bf16.mxu0 %v4994_v30 }
 0x1e7   :  { %1689 = vmatprep.subr.bf16.mxu1 %v4997_v31 }
 0x1e9   :  { %1649 = vmatpush2.bf16.msra.mxu0 %v4992_v32 }
 0x1ea   :  { %1690 = vmatpush2.bf16.msra.mxu1 %v4995_v33  ;;  %1650 = vmatprep.subr.bf16.mxu0 %v5000_v34 }
 0x1eb   :  { %1691 = vmatprep.subr.bf16.mxu1 %v5003_v36 }
 0x1ed   :  { %1651 = vmatpush2.bf16.msra.mxu0 %v4998_v37 }
 0x1ee   :  { %1692 = vmatpush2.bf16.msra.mxu1 %v5001_v38 }
 0x1f0   :  { %1653 = vmatmul.mubr.bf16.vlgmr.msra.gmra.mxu0 %v5658_v20 }
 0x1f1   :  { %1694 = vmatmul.mubr.bf16.vlgmr.msra.gmra.mxu1 %v5662_v11 }
 0x270   :  { %v1572_v39 = vpop.f32.mrf.mxu0 }
 0x271   :  { %v1613_v40 = vpop.f32.mrf.mxu1 }
 0x272   :  { %v5674_v41 = vadd.f32 %v1613_v40, %v1572_v39  ;;  %v1574_v42 = vpop.f32.mrf.mxu0 }
 0x273   :  { %v1615_v43 = vpop.f32.mrf.mxu1 }
 0x274   :  { %v1702_v45 = vrot.slane %v5674_v41, 4  ;;  %v1726_v49 = vmul.f32 %v5674_v41, %v5674_v41  ;;  %v5679_v50 = vadd.f32 %v1615_v43, %v1574_v42  ;;  %v1576_v51 = vpop.f32.mrf.mxu0 }
 0x275   :  { %v1617_v52 = vpop.f32.mrf.mxu1 }
 0x276   :  { %v1703_v53 = vadd.f32 %v1702_v45, %v5674_v41  ;;  %v1730_v20 = vrot.slane %v1726_v49, 4  ;;  %v1708_v11 = vrot.slane %v5679_v50, 4  ;;  %v1727_v54 = vmul.f32 %v5679_v50, %v5679_v50  ;;  %v1577_v5 = vpop.f32.mrf.mxu0 }
 0x277   :  { %v1618_v21 = vpop.f32.mrf.mxu1 }
 0x278   :  { %v1704_v55 = vrot.slane %v1703_v53, 2  ;;  %v1731_v56 = vadd.f32 %v1730_v20, %v1726_v49  ;;  %v1709_v58 = vadd.f32 %v1708_v11, %v5679_v50  ;;  %v1736_v60 = vrot.slane %v1727_v54, 4 }
 0x27a   :  { %v1705_v61 = vadd.f32 %v1704_v55, %v1703_v53  ;;  %v1732_v62 = vrot.slane %v1731_v56, 2  ;;  %v1710_v63 = vrot.slane %v1709_v58, 2  ;;  %v1737_v0 = vadd.f32 %v1736_v60, %v1727_v54 }
 0x27c   :  { %v1706_v1 = vrot.slane %v1705_v61, 1  ;;  %v1733_v2 = vadd.f32 %v1732_v62, %v1731_v56  ;;  %v1711_v3 = vadd.f32 %v1710_v63, %v1709_v58  ;;  %v1738_v6 = vrot.slane %v1737_v0, 2 }
 0x27e   :  { %v1707_v8 = vadd.f32 %v1706_v1, %v1705_v61  ;;  %v1734_v57 = vrot.slane %v1733_v2, 1  ;;  %v1712_v59 = vrot.slane %v1711_v3, 1  ;;  %v1739_v7 = vadd.f32 %v1738_v6, %v1737_v0 }
 0x280   :  { %v1735_v9 = vadd.f32 %v1734_v57, %v1733_v2  ;;  %v5686_v12 = vmul.f32 0.125, %v1707_v8  ;;  %v1713_v13 = vadd.f32 %v1712_v59, %v1711_v3  ;;  %v1740_v14 = vrot.slane %v1739_v7, 1 }
 0x282   :  { %v1758_v15 = vmul.f32 0.125, %v1735_v9  ;;  %v1762_v16 = vmul.f32 %v5686_v12, %v5686_v12  ;;  %v1741_v17 = vadd.f32 %v1740_v14, %v1739_v7  ;;  %v5690_v18 = vmul.f32 0.125, %v1713_v13 }
 0x284   :  { %v1766_v4 = vsub.f32 %v1758_v15, %v1762_v16  ;;  %v1759_v19 = vmul.f32 0.125, %v1741_v17  ;;  %v1763_v10 = vmul.f32 %v5690_v18, %v5690_v18 }
 0x286   :  { %v1770_v22 = vmax.f32 %v1766_v4, 0.0  ;;  %v1767_v23 = vsub.f32 %v1759_v19, %v1763_v10 }
 0x288   :  { %v1778_v24 = vadd.f32 1e-05, %v1770_v22  ;;  %v1771_v25 = vmax.f32 %v1767_v23, 0.0 }
 0x28a   :  { %v1779_v26 = vadd.f32 1e-05, %v1771_v25  ;;  %5004 = vrsqrt.f32 %v1778_v24 }
 0x28c   :  { %5006 = vrsqrt.f32 %v1779_v26 }
 0x297   :  { %v5005_v27 = vpop.eup %5004 }
 0x299   :  { %v5007_v28 = vpop.eup %5006 }
 0x29a   :  { %v1790_v29 = vcombine.low %v5005_v27, %v5007_v28 }
 0x29c   :  { %v1798_v26 = vrot.slane %v1790_v29, %v5630_v35 }
 0x2b0   :  { %v1654_v30 = vpop.f32.mrf.mxu0 }
 0x2b1   :  { %v1695_v31 = vpop.f32.mrf.mxu1 }
 0x2b2   :  { %v5694_v32 = vadd.f32 %v1695_v31, %v1654_v30  ;;  %v1656_v33 = vpop.f32.mrf.mxu0  ;;  %v1775_v30 = vld [vmem:[#allocation10 + $0x2] ss:$8 sm:$0xf] }
 0x2b3   :  { %v1697_v34 = vpop.f32.mrf.mxu1 }
 0x2b4   :  { %v1714_v36 = vrot.slane %v5694_v32, 4  ;;  %v1728_v37 = vmul.f32 %v5694_v32, %v5694_v32  ;;  %v5699_v38 = vadd.f32 %v1697_v34, %v1656_v33  ;;  %v1658_v39 = vpop.f32.mrf.mxu0 }
 0x2b5   :  { %v1699_v40 = vpop.f32.mrf.mxu1 }
 0x2b6   :  { %v1715_v42 = vadd.f32 %v1714_v36, %v5694_v32  ;;  %v1742_v43 = vrot.slane %v1728_v37, 4  ;;  %v1720_v45 = vrot.slane %v5699_v38, 4  ;;  %v1729_v49 = vmul.f32 %v5699_v38, %v5699_v38  ;;  %v1659_v51 = vpop.f32.mrf.mxu0 }
 0x2b7   :  { %v1700_v52 = vpop.f32.mrf.mxu1 }
 0x2b8   :  { %v1716_v53 = vrot.slane %v1715_v42, 2  ;;  %v1743_v20 = vadd.f32 %v1742_v43, %v1728_v37  ;;  %v1721_v11 = vadd.f32 %v1720_v45, %v5699_v38  ;;  %v1748_v54 = vrot.slane %v1729_v49, 4 }
 0x2ba   :  { %v1717_v5 = vadd.f32 %v1716_v53, %v1715_v42  ;;  %v1744_v21 = vrot.slane %v1743_v20, 2  ;;  %v1722_v55 = vrot.slane %v1721_v11, 2  ;;  %v1749_v56 = vadd.f32 %v1748_v54, %v1729_v49  ;;  %v1777_v54 = vld [vmem:[#allocation10 + $0x3] ss:$8 sm:$0xf] }
 0x2bc   :  { %v1718_v58 = vrot.slane %v1717_v5, 1  ;;  %v1745_v60 = vadd.f32 %v1744_v21, %v1743_v20  ;;  %v1723_v61 = vadd.f32 %v1722_v55, %v1721_v11  ;;  %v1750_v62 = vrot.slane %v1749_v56, 2 }
 0x2be   :  { %v1719_v63 = vadd.f32 %v1718_v58, %v1717_v5  ;;  %v1746_v0 = vrot.slane %v1745_v60, 1  ;;  %v1724_v1 = vrot.slane %v1723_v61, 1  ;;  %v1751_v2 = vadd.f32 %v1750_v62, %v1749_v56 }
 0x2c0   :  { %v1747_v3 = vadd.f32 %v1746_v0, %v1745_v60  ;;  %v1756_v6 = vmul.f32 0.125, %v1719_v63  ;;  %v1725_v8 = vadd.f32 %v1724_v1, %v1723_v61  ;;  %v1752_v57 = vrot.slane %v1751_v2, 1 }
 0x2c2   :  { %v1760_v59 = vmul.f32 0.125, %v1747_v3  ;;  %v1764_v7 = vmul.f32 %v1756_v6, %v1756_v6  ;;  %v1753_v9 = vadd.f32 %v1752_v57, %v1751_v2  ;;  %v1757_v13 = vmul.f32 0.125, %v1725_v8 }
 0x2c4   :  { %v1768_v14 = vsub.f32 %v1760_v59, %v1764_v7  ;;  %v1761_v15 = vmul.f32 0.125, %v1753_v9  ;;  %v1765_v16 = vmul.f32 %v1757_v13, %v1757_v13 }
 0x2c6   :  { %v1772_v17 = vmax.f32 %v1768_v14, 0.0  ;;  %v1769_v4 = vsub.f32 %v1761_v15, %v1765_v16 }
 0x2c8   :  { %v1780_v19 = vadd.f32 1e-05, %v1772_v17  ;;  %v1773_v10 = vmax.f32 %v1769_v4, 0.0 }
 0x2ca   :  { %v1781_v22 = vadd.f32 1e-05, %v1773_v10  ;;  %5008 = vrsqrt.f32 %v1780_v19 }
 0x2cc   :  { %5010 = vrsqrt.f32 %v1781_v22 }
 0x2d7   :  { %v5009_v23 = vpop.eup %5008 }
 0x2d9   :  { %v5011_v24 = vpop.eup %5010 }
 0x2da   :  { %v1791_v25 = vcombine.low %v5009_v23, %v5011_v24 }
 0x2dc   :  { %v1805_v27 = vrot.slane %v1791_v25, %v5630_v35 }
 0x2de   :  { %v1806_v28 = vcombine.low %v1798_v26, %v1805_v27 }
 0x2e0   :  { %v1813_v31 = vrot.slane %v1806_v28, %v5630_v35 }
 0x2e2   :  { %v1815_v33 = vmul.f32 %v1813_v31, %v1775_v30 }
 0x2e4   :  { %v1820_v34 = vrot.slane %v1815_v33, %v5634_v44  ;;  %v1824_v36 = vrot.slane %v1815_v33, %v5637_v46  ;;  %v1828_v37 = vrot.slane %v1815_v33, %v5639_v47  ;;  %v1832_v39 = vrot.slane %v1815_v33, %v5641_v48 }
 0x2e6   :  { %v1837_v40 = vmul.f32 %v1820_v34, %v5686_v12  ;;  %v1838_v42 = vmul.f32 %v1824_v36, %v5690_v18  ;;  %v1839_v29 = vmul.f32 %v1828_v37, %v1756_v6  ;;  %v1840_v43 = vmul.f32 %v1832_v39, %v1757_v13 }
 0x2e7   :  { %v1871_v45 = vmul.f32 %v1820_v34, %v5674_v41  ;;  %v1872_v49 = vmul.f32 %v1824_v36, %v5679_v50  ;;  %v1873_v12 = vmul.f32 %v1828_v37, %v5694_v32  ;;  %v1874_v18 = vmul.f32 %v1832_v39, %v5699_v38 }
 0x2e8   :  { %v1845_v51 = vcombine.low %v1837_v40, %v1838_v42  ;;  %v1846_v52 = vcombine.low %v1839_v29, %v1840_v43 }
 0x2ea   :  { %v1853_v53 = vrot.slane %v1845_v51, %v5630_v35  ;;  %v1860_v20 = vrot.slane %v1846_v52, %v5630_v35 }
 0x2ec   :  { %v1861_v11 = vcombine.low %v1853_v53, %v1860_v20 }
 0x2ee   :  { %v1868_v5 = vrot.slane %v1861_v11, %v5630_v35 }
 0x2f0   :  { %v1870_v21 = vsub.f32 %v1777_v54, %v1868_v5 }
 0x2f2   :  { %v1879_v55 = vrot.slane %v1870_v21, %v5634_v44  ;;  %v1883_v41 = vrot.slane %v1870_v21, %v5637_v46  ;;  %v1887_v50 = vrot.slane %v1870_v21, %v5639_v47  ;;  %v1891_v56 = vrot.slane %v1870_v21, %v5641_v48 }
 0x2f4   :  { %v1896_v58 = vadd.f32 %v1879_v55, %v1871_v45  ;;  %v1897_v60 = vadd.f32 %v1883_v41, %v1872_v49  ;;  %v1898_v61 = vadd.f32 %v1887_v50, %v1873_v12  ;;  %v1899_v62 = vadd.f32 %v1891_v56, %v1874_v18 }
 0x2f6   :  { %v1900_v63 = vmax.f32 %v1896_v58, 0.0  ;;  %v1901_v0 = vmax.f32 %v1897_v60, 0.0  ;;  %v1902_v1 = vmax.f32 %v1898_v61, 0.0  ;;  %v1903_v2 = vmax.f32 %v1899_v62, 0.0 }
 0x2f8   :  { %v5726_v3 = vpack.c.bf16 %v1900_v63, %v1900_v63  ;;  %v5728_v32 = vpack.c.bf16 %v1901_v0, %v1901_v0  ;;  %v5730_v38 = vpack.c.bf16 %v1902_v1, %v1902_v1  ;;  %v5732_v6 = vpack.c.bf16 %v1903_v2, %v1903_v2 }
 0x2f9   :  { %5538 = dma.done.wait [#allocation5 + $0x1], 16384 }
 0x2fa   :  { %5539 = vsyncadd [#allocation5 + $0x1], 4294950912  ;;  %2710 = vmatprep.mubr.bf16.mxu0 %v5728_v32  ;;  %2751 = vmatprep.mubr.bf16.mxu1 %v5732_v6  ;;  %v5012_v8 = vld [vmem:[#allocation3 + $0xe4] ss:$16 sps:$4 sm:$0xff]   ;;  %v5016_v59 = vld [vmem:[#allocation3 + $0xe0] ss:$16 sps:$4 sm:$0xff]  }
 0x2fb   :  { %v5014_v57 = vld [vmem:[#allocation3 + $0x2e4] ss:$16 sps:$4 sm:$0xff]   ;;  %2678 = vmatprep.subr.bf16.mxu0 %v5012_v8  ;;  %v5017_v7 = vld [vmem:[#allocation3 + $0x2e0] ss:$16 sps:$4 sm:$0xff]  }
 0x2fc   :  { %2719 = vmatprep.subr.bf16.mxu1 %v5014_v57  ;;  %v5018_v9 = vld [vmem:[#allocation3 + $0xc4] ss:$16 sps:$4 sm:$0xff]   ;;  %2679 = vmatpush1.bf16.msra.mxu0 %v5016_v59  ;;  %v5022_v14 = vld [vmem:[#allocation3 + $0xc0] ss:$16 sps:$4 sm:$0xff]  }
 0x2fd   :  { %2720 = vmatpush1.bf16.msra.mxu1 %v5017_v7  ;;  %v5020_v13 = vld [vmem:[#allocation3 + $0x2c4] ss:$16 sps:$4 sm:$0xff]   ;;  %2680 = vmatprep.subr.bf16.mxu0 %v5018_v9  ;;  %v5023_v15 = vld [vmem:[#allocation3 + $0x2c0] ss:$16 sps:$4 sm:$0xff]  }
 0x2fe   :  { %2721 = vmatprep.subr.bf16.mxu1 %v5020_v13  ;;  %v5024_v16 = vld [vmem:[#allocation3 + $0xa4] ss:$16 sps:$4 sm:$0xff]   ;;  %v5028_v4 = vld [vmem:[#allocation3 + $0xa0] ss:$16 sps:$4 sm:$0xff]  }
 0x2ff   :  { %v5026_v17 = vld [vmem:[#allocation3 + $0x2a4] ss:$16 sps:$4 sm:$0xff]   ;;  %v5029_v19 = vld [vmem:[#allocation3 + $0x2a0] ss:$16 sps:$4 sm:$0xff]  }
 0x300   :  { %2681 = vmatpush1.bf16.msra.mxu0 %v5022_v14  ;;  %v5030_v10 = vld [vmem:[#allocation3 + $0x84] ss:$16 sps:$4 sm:$0xff]   ;;  %v5034_v23 = vld [vmem:[#allocation3 + $0x80] ss:$16 sps:$4 sm:$0xff]  }
 0x301   :  { %2722 = vmatpush1.bf16.msra.mxu1 %v5023_v15  ;;  %2682 = vmatprep.subr.bf16.mxu0 %v5024_v16  ;;  %v5032_v22 = vld [vmem:[#allocation3 + $0x284] ss:$16 sps:$4 sm:$0xff]   ;;  %v5035_v24 = vld [vmem:[#allocation3 + $0x280] ss:$16 sps:$4 sm:$0xff]  }
 0x302   :  { %2723 = vmatprep.subr.bf16.mxu1 %v5026_v17  ;;  %v5036_v25 = vld [vmem:[#allocation3 + $0x64] ss:$16 sps:$4 sm:$0xff]   ;;  %v5040_v27 = vld [vmem:[#allocation3 + $0x60] ss:$16 sps:$4 sm:$0xff]   ;;  %v5110_v17 = vld [vmem:[#allocation3 + $0xec] ss:$16 sps:$4 sm:$0xff]  }
 0x303   :  { %v5038_v26 = vld [vmem:[#allocation3 + $0x264] ss:$16 sps:$4 sm:$0xff]   ;;  %v5041_v28 = vld [vmem:[#allocation3 + $0x260] ss:$16 sps:$4 sm:$0xff]  }
 0x304   :  { %2683 = vmatpush1.bf16.msra.mxu0 %v5028_v4  ;;  %v5042_v30 = vld [vmem:[#allocation3 + $0x44] ss:$16 sps:$4 sm:$0xff]   ;;  %v5046_v33 = vld [vmem:[#allocation3 + $0x40] ss:$16 sps:$4 sm:$0xff]   ;;  %v5113_v4 = vld [vmem:[#allocation3 + $0x2ec] ss:$16 sps:$4 sm:$0xff]  }
 0x305   :  { %2724 = vmatpush1.bf16.msra.mxu1 %v5029_v19  ;;  %2684 = vmatprep.subr.bf16.mxu0 %v5030_v10  ;;  %v5044_v31 = vld [vmem:[#allocation3 + $0x244] ss:$16 sps:$4 sm:$0xff]   ;;  %v5047_v34 = vld [vmem:[#allocation3 + $0x240] ss:$16 sps:$4 sm:$0xff]   ;;  %v5108_v19 = vld [vmem:[#allocation3 + $0xe8] ss:$16 sps:$4 sm:$0xff]  }
 0x306   :  { %2725 = vmatprep.subr.bf16.mxu1 %v5032_v22  ;;  %v5048_v36 = vld [vmem:[#allocation3 + $0x24] ss:$16 sps:$4 sm:$0xff]   ;;  %v5052_v39 = vld [vmem:[#allocation3 + $0x20] ss:$16 sps:$4 sm:$0xff]   ;;  %v5111_v10 = vld [vmem:[#allocation3 + $0x2e8] ss:$16 sps:$4 sm:$0xff]  }
 0x307   :  { %v5050_v37 = vld [vmem:[#allocation3 + $0x224] ss:$16 sps:$4 sm:$0xff]   ;;  %v5053_v40 = vld [vmem:[#allocation3 + $0x220] ss:$16 sps:$4 sm:$0xff]   ;;  %v5116_v22 = vld [vmem:[#allocation3 + $0xcc] ss:$16 sps:$4 sm:$0xff]  }
 0x308   :  { %2685 = vmatpush1.bf16.msra.mxu0 %v5034_v23  ;;  %v5054_v42 = vld [vmem:[#allocation3 + $0x4] ss:$16 sps:$4 sm:$0xff]   ;;  %v5058_v43 = vld [vmem:[#allocation3] ss:$16 sps:$4 sm:$0xff]   ;;  %v5119_v23 = vld [vmem:[#allocation3 + $0x2cc] ss:$16 sps:$4 sm:$0xff]  }
 0x309   :  { %2726 = vmatpush1.bf16.msra.mxu1 %v5035_v24  ;;  %2686 = vmatprep.subr.bf16.mxu0 %v5036_v25  ;;  %v5056_v29 = vld [vmem:[#allocation3 + $0x204] ss:$16 sps:$4 sm:$0xff]   ;;  %v5059_v45 = vld [vmem:[#allocation3 + $0x200] ss:$16 sps:$4 sm:$0xff]   ;;  %v5114_v24 = vld [vmem:[#allocation3 + $0xc8] ss:$16 sps:$4 sm:$0xff]  }
 0x30a   :  { %2727 = vmatprep.subr.bf16.mxu1 %v5038_v26  ;;  %v5060_v49 = vld [vmem:[#allocation3 + $0x1e4] ss:$16 sps:$4 sm:$0xff]   ;;  %v5064_v52 = vld [vmem:[#allocation3 + $0x1e0] ss:$16 sps:$4 sm:$0xff]   ;;  %v5117_v25 = vld [vmem:[#allocation3 + $0x2c8] ss:$16 sps:$4 sm:$0xff]  }
 0x30b   :  { %v5062_v51 = vld [vmem:[#allocation3 + $0x3e4] ss:$16 sps:$4 sm:$0xff]   ;;  %v5065_v53 = vld [vmem:[#allocation3 + $0x3e0] ss:$16 sps:$4 sm:$0xff]   ;;  %v5122_v26 = vld [vmem:[#allocation3 + $0xac] ss:$16 sps:$4 sm:$0xff]  }
 0x30c   :  { %2687 = vmatpush1.bf16.msra.mxu0 %v5040_v27  ;;  %v5066_v20 = vld [vmem:[#allocation3 + $0x1c4] ss:$16 sps:$4 sm:$0xff]   ;;  %v5070_v54 = vld [vmem:[#allocation3 + $0x1c0] ss:$16 sps:$4 sm:$0xff]   ;;  %v5125_v27 = vld [vmem:[#allocation3 + $0x2ac] ss:$16 sps:$4 sm:$0xff]  }
 0x30d   :  { %2728 = vmatpush1.bf16.msra.mxu1 %v5041_v28  ;;  %2688 = vmatprep.subr.bf16.mxu0 %v5042_v30  ;;  %v5068_v11 = vld [vmem:[#allocation3 + $0x3c4] ss:$16 sps:$4 sm:$0xff]   ;;  %v5071_v5 = vld [vmem:[#allocation3 + $0x3c0] ss:$16 sps:$4 sm:$0xff]   ;;  %v5120_v28 = vld [vmem:[#allocation3 + $0xa8] ss:$16 sps:$4 sm:$0xff]  }
 0x30e   :  { %2729 = vmatprep.subr.bf16.mxu1 %v5044_v31  ;;  %v5072_v21 = vld [vmem:[#allocation3 + $0x1a4] ss:$16 sps:$4 sm:$0xff]   ;;  %v5076_v18 = vld [vmem:[#allocation3 + $0x1a0] ss:$16 sps:$4 sm:$0xff]   ;;  %v5123_v30 = vld [vmem:[#allocation3 + $0x2a8] ss:$16 sps:$4 sm:$0xff]  }
 0x30f   :  { %v5074_v12 = vld [vmem:[#allocation3 + $0x3a4] ss:$16 sps:$4 sm:$0xff]   ;;  %v5077_v55 = vld [vmem:[#allocation3 + $0x3a0] ss:$16 sps:$4 sm:$0xff]   ;;  %v5128_v31 = vld [vmem:[#allocation3 + $0x8c] ss:$16 sps:$4 sm:$0xff]  }
 0x310   :  { %2689 = vmatpush1.bf16.msra.mxu0 %v5046_v33  ;;  %v5078_v41 = vld [vmem:[#allocation3 + $0x184] ss:$16 sps:$4 sm:$0xff]   ;;  %v5082_v56 = vld [vmem:[#allocation3 + $0x180] ss:$16 sps:$4 sm:$0xff]   ;;  %v5131_v33 = vld [vmem:[#allocation3 + $0x28c] ss:$16 sps:$4 sm:$0xff]  }
 0x311   :  { %2730 = vmatpush1.bf16.msra.mxu1 %v5047_v34  ;;  %2690 = vmatprep.subr.bf16.mxu0 %v5048_v36  ;;  %v5080_v50 = vld [vmem:[#allocation3 + $0x384] ss:$16 sps:$4 sm:$0xff]   ;;  %v5083_v58 = vld [vmem:[#allocation3 + $0x380] ss:$16 sps:$4 sm:$0xff]   ;;  %v5126_v34 = vld [vmem:[#allocation3 + $0x88] ss:$16 sps:$4 sm:$0xff]  }
 0x312   :  { %2731 = vmatprep.subr.bf16.mxu1 %v5050_v37  ;;  %v5084_v60 = vld [vmem:[#allocation3 + $0x164] ss:$16 sps:$4 sm:$0xff]   ;;  %v5088_v62 = vld [vmem:[#allocation3 + $0x160] ss:$16 sps:$4 sm:$0xff]   ;;  %v5129_v36 = vld [vmem:[#allocation3 + $0x288] ss:$16 sps:$4 sm:$0xff]  }
 0x313   :  { %v5086_v61 = vld [vmem:[#allocation3 + $0x364] ss:$16 sps:$4 sm:$0xff]   ;;  %v5089_v63 = vld [vmem:[#allocation3 + $0x360] ss:$16 sps:$4 sm:$0xff]   ;;  %v5134_v37 = vld [vmem:[#allocation3 + $0x6c] ss:$16 sps:$4 sm:$0xff]  }
 0x314   :  { %2691 = vmatpush1.bf16.msra.mxu0 %v5052_v39  ;;  %v5090_v0 = vld [vmem:[#allocation3 + $0x144] ss:$16 sps:$4 sm:$0xff]   ;;  %v5094_v2 = vld [vmem:[#allocation3 + $0x140] ss:$16 sps:$4 sm:$0xff]   ;;  %v5137_v39 = vld [vmem:[#allocation3 + $0x26c] ss:$16 sps:$4 sm:$0xff]  }
 0x315   :  { %2732 = vmatpush1.bf16.msra.mxu1 %v5053_v40  ;;  %2692 = vmatprep.subr.bf16.mxu0 %v5054_v42  ;;  %v5092_v1 = vld [vmem:[#allocation3 + $0x344] ss:$16 sps:$4 sm:$0xff]   ;;  %v5095_v8 = vld [vmem:[#allocation3 + $0x340] ss:$16 sps:$4 sm:$0xff]   ;;  %v5132_v40 = vld [vmem:[#allocation3 + $0x68] ss:$16 sps:$4 sm:$0xff]  }
 0x316   :  { %2733 = vmatprep.subr.bf16.mxu1 %v5056_v29  ;;  %v5096_v57 = vld [vmem:[#allocation3 + $0x124] ss:$16 sps:$4 sm:$0xff]   ;;  %v5100_v7 = vld [vmem:[#allocation3 + $0x120] ss:$16 sps:$4 sm:$0xff]   ;;  %v5143_v42 = vld [vmem:[#allocation3 + $0x24c] ss:$16 sps:$4 sm:$0xff]  }
 0x317   :  { %v5098_v59 = vld [vmem:[#allocation3 + $0x324] ss:$16 sps:$4 sm:$0xff]   ;;  %v5101_v9 = vld [vmem:[#allocation3 + $0x320] ss:$16 sps:$4 sm:$0xff]   ;;  %v5138_v29 = vld [vmem:[#allocation3 + $0x48] ss:$16 sps:$4 sm:$0xff]  }
 0x318   :  { %2693 = vmatpush1.bf16.msra.mxu0 %v5058_v43  ;;  %v5102_v13 = vld [vmem:[#allocation3 + $0x104] ss:$16 sps:$4 sm:$0xff]   ;;  %v5106_v15 = vld [vmem:[#allocation3 + $0x100] ss:$16 sps:$4 sm:$0xff]   ;;  %v5141_v43 = vld [vmem:[#allocation3 + $0x248] ss:$16 sps:$4 sm:$0xff]  }
 0x319   :  { %2734 = vmatpush1.bf16.msra.mxu1 %v5059_v45  ;;  %2694 = vmatprep.subr.bf16.mxu0 %v5060_v49  ;;  %v5104_v14 = vld [vmem:[#allocation3 + $0x304] ss:$16 sps:$4 sm:$0xff]   ;;  %v5107_v16 = vld [vmem:[#allocation3 + $0x300] ss:$16 sps:$4 sm:$0xff]   ;;  %v5146_v45 = vld [vmem:[#allocation3 + $0x2c] ss:$16 sps:$4 sm:$0xff]  }
 0x31a   :  { %2735 = vmatprep.subr.bf16.mxu1 %v5062_v51  ;;  %v5149_v49 = vld [vmem:[#allocation3 + $0x22c] ss:$16 sps:$4 sm:$0xff]   ;;  %v5144_v51 = vld [vmem:[#allocation3 + $0x28] ss:$16 sps:$4 sm:$0xff]  }
 0x31c   :  { %2695 = vmatpush2.bf16.msra.mxu0 %v5064_v52  ;;  %v5147_v52 = vld [vmem:[#allocation3 + $0x228] ss:$16 sps:$4 sm:$0xff]  }
 0x31d   :  { %2736 = vmatpush2.bf16.msra.mxu1 %v5065_v53  ;;  %2696 = vmatprep.subr.bf16.mxu0 %v5066_v20  ;;  %v5152_v53 = vld [vmem:[#allocation3 + $0xc] ss:$16 sps:$4 sm:$0xff]  }
 0x31e   :  { %2737 = vmatprep.subr.bf16.mxu1 %v5068_v11  ;;  %v5155_v20 = vld [vmem:[#allocation3 + $0x20c] ss:$16 sps:$4 sm:$0xff]   ;;  %v5150_v11 = vld [vmem:[#allocation3 + $0x8] ss:$16 sps:$4 sm:$0xff]  }
 0x320   :  { %2697 = vmatpush2.bf16.msra.mxu0 %v5070_v54  ;;  %v5153_v54 = vld [vmem:[#allocation3 + $0x208] ss:$16 sps:$4 sm:$0xff]  }
 0x321   :  { %2738 = vmatpush2.bf16.msra.mxu1 %v5071_v5  ;;  %2698 = vmatprep.subr.bf16.mxu0 %v5072_v21  ;;  %v5158_v5 = vld [vmem:[#allocation3 + $0x1ec] ss:$16 sps:$4 sm:$0xff]  }
 0x322   :  { %2739 = vmatprep.subr.bf16.mxu1 %v5074_v12  ;;  %v5161_v21 = vld [vmem:[#allocation3 + $0x3ec] ss:$16 sps:$4 sm:$0xff]   ;;  %v5156_v12 = vld [vmem:[#allocation3 + $0x1e8] ss:$16 sps:$4 sm:$0xff]  }
 0x324   :  { %2699 = vmatpush2.bf16.msra.mxu0 %v5076_v18  ;;  %v5159_v18 = vld [vmem:[#allocation3 + $0x3e8] ss:$16 sps:$4 sm:$0xff]  }
 0x325   :  { %2740 = vmatpush2.bf16.msra.mxu1 %v5077_v55  ;;  %2700 = vmatprep.subr.bf16.mxu0 %v5078_v41  ;;  %v5164_v55 = vld [vmem:[#allocation3 + $0x1cc] ss:$16 sps:$4 sm:$0xff]  }
 0x326   :  { %2741 = vmatprep.subr.bf16.mxu1 %v5080_v50  ;;  %v5167_v41 = vld [vmem:[#allocation3 + $0x3cc] ss:$16 sps:$4 sm:$0xff]   ;;  %v5162_v50 = vld [vmem:[#allocation3 + $0x1c8] ss:$16 sps:$4 sm:$0xff]  }
 0x328   :  { %2701 = vmatpush2.bf16.msra.mxu0 %v5082_v56  ;;  %v5165_v56 = vld [vmem:[#allocation3 + $0x3c8] ss:$16 sps:$4 sm:$0xff]  }
 0x329   :  { %2742 = vmatpush2.bf16.msra.mxu1 %v5083_v58  ;;  %2702 = vmatprep.subr.bf16.mxu0 %v5084_v60  ;;  %v5170_v58 = vld [vmem:[#allocation3 + $0x1ac] ss:$16 sps:$4 sm:$0xff]  }
 0x32a   :  { %2743 = vmatprep.subr.bf16.mxu1 %v5086_v61  ;;  %v5173_v60 = vld [vmem:[#allocation3 + $0x3ac] ss:$16 sps:$4 sm:$0xff]   ;;  %v5168_v61 = vld [vmem:[#allocation3 + $0x1a8] ss:$16 sps:$4 sm:$0xff]  }
 0x32c   :  { %2703 = vmatpush2.bf16.msra.mxu0 %v5088_v62  ;;  %v5171_v62 = vld [vmem:[#allocation3 + $0x3a8] ss:$16 sps:$4 sm:$0xff]  }
 0x32d   :  { %2744 = vmatpush2.bf16.msra.mxu1 %v5089_v63  ;;  %2704 = vmatprep.subr.bf16.mxu0 %v5090_v0  ;;  %v5176_v63 = vld [vmem:[#allocation3 + $0x18c] ss:$16 sps:$4 sm:$0xff]  }
 0x32e   :  { %2745 = vmatprep.subr.bf16.mxu1 %v5092_v1  ;;  %v5179_v0 = vld [vmem:[#allocation3 + $0x38c] ss:$16 sps:$4 sm:$0xff]   ;;  %v5174_v1 = vld [vmem:[#allocation3 + $0x188] ss:$16 sps:$4 sm:$0xff]  }
 0x330   :  { %2705 = vmatpush2.bf16.msra.mxu0 %v5094_v2  ;;  %v5177_v2 = vld [vmem:[#allocation3 + $0x388] ss:$16 sps:$4 sm:$0xff]  }
 0x331   :  { %2746 = vmatpush2.bf16.msra.mxu1 %v5095_v8  ;;  %2706 = vmatprep.subr.bf16.mxu0 %v5096_v57  ;;  %v5182_v8 = vld [vmem:[#allocation3 + $0x16c] ss:$16 sps:$4 sm:$0xff]  }
 0x332   :  { %2747 = vmatprep.subr.bf16.mxu1 %v5098_v59  ;;  %v5185_v57 = vld [vmem:[#allocation3 + $0x36c] ss:$16 sps:$4 sm:$0xff]   ;;  %v5180_v59 = vld [vmem:[#allocation3 + $0x168] ss:$16 sps:$4 sm:$0xff]  }
 0x334   :  { %2707 = vmatpush2.bf16.msra.mxu0 %v5100_v7  ;;  %v5183_v7 = vld [vmem:[#allocation3 + $0x368] ss:$16 sps:$4 sm:$0xff]  }
 0x335   :  { %2748 = vmatpush2.bf16.msra.mxu1 %v5101_v9  ;;  %2708 = vmatprep.subr.bf16.mxu0 %v5102_v13  ;;  %v5188_v9 = vld [vmem:[#allocation3 + $0x14c] ss:$16 sps:$4 sm:$0xff]  }
 0x336   :  { %2749 = vmatprep.subr.bf16.mxu1 %v5104_v14  ;;  %v5191_v13 = vld [vmem:[#allocation3 + $0x34c] ss:$16 sps:$4 sm:$0xff]   ;;  %v5186_v14 = vld [vmem:[#allocation3 + $0x148] ss:$16 sps:$4 sm:$0xff]  }
 0x338   :  { %2709 = vmatpush2.bf16.msra.mxu0 %v5106_v15  ;;  %v5189_v15 = vld [vmem:[#allocation3 + $0x348] ss:$16 sps:$4 sm:$0xff]  }
 0x339   :  { %2750 = vmatpush2.bf16.msra.mxu1 %v5107_v16  ;;  %2760 = vmatprep.subr.bf16.mxu0 %v5110_v17  ;;  %v5194_v16 = vld [vmem:[#allocation3 + $0x12c] ss:$16 sps:$4 sm:$0xff]  }
 0x33a   :  { %2801 = vmatprep.subr.bf16.mxu1 %v5113_v4  ;;  %v5197_v17 = vld [vmem:[#allocation3 + $0x32c] ss:$16 sps:$4 sm:$0xff]   ;;  %v5192_v4 = vld [vmem:[#allocation3 + $0x128] ss:$16 sps:$4 sm:$0xff]  }
 0x33b   :  { %2711 = vmatmul.mubr.bf16.vlgmr.msra.gmra.mxu0 %v5726_v3 }
 0x33c   :  { %2752 = vmatmul.mubr.bf16.vlgmr.msra.gmra.mxu1 %v5730_v38  ;;  %2761 = vmatpush1.bf16.msra.mxu0 %v5108_v19  ;;  %v5195_v19 = vld [vmem:[#allocation3 + $0x328] ss:$16 sps:$4 sm:$0xff]  }
 0x33d   :  { %2802 = vmatpush1.bf16.msra.mxu1 %v5111_v10  ;;  %2762 = vmatprep.subr.bf16.mxu0 %v5116_v22  ;;  %v5200_v10 = vld [vmem:[#allocation3 + $0x10c] ss:$16 sps:$4 sm:$0xff]  }
 0x33e   :  { %2803 = vmatprep.subr.bf16.mxu1 %v5119_v23  ;;  %2792 = vmatprep.mubr.bf16.mxu0 %v5728_v32  ;;  %v5135_v32 = vld [vmem:[#allocation3 + $0x268] ss:$16 sps:$4 sm:$0xff]   ;;  %v5203_v22 = vld [vmem:[#allocation3 + $0x30c] ss:$16 sps:$4 sm:$0xff]  }
 0x33f   :  { %2833 = vmatprep.mubr.bf16.mxu1 %v5732_v6  ;;  %v5140_v6 = vld [vmem:[#allocation3 + $0x4c] ss:$16 sps:$4 sm:$0xff]   ;;  %v5198_v23 = vld [vmem:[#allocation3 + $0x108] ss:$16 sps:$4 sm:$0xff]  }
 0x340   :  { %2763 = vmatpush1.bf16.msra.mxu0 %v5114_v24  ;;  %v5201_v24 = vld [vmem:[#allocation3 + $0x308] ss:$16 sps:$4 sm:$0xff]  }
 0x341   :  { %2804 = vmatpush1.bf16.msra.mxu1 %v5117_v25  ;;  %2764 = vmatprep.subr.bf16.mxu0 %v5122_v26 }
 0x342   :  { %2805 = vmatprep.subr.bf16.mxu1 %v5125_v27 }
 0x344   :  { %2765 = vmatpush1.bf16.msra.mxu0 %v5120_v28 }
 0x345   :  { %2806 = vmatpush1.bf16.msra.mxu1 %v5123_v30  ;;  %2766 = vmatprep.subr.bf16.mxu0 %v5128_v31 }
 0x346   :  { %2807 = vmatprep.subr.bf16.mxu1 %v5131_v33 }
 0x348   :  { %2767 = vmatpush1.bf16.msra.mxu0 %v5126_v34 }
 0x349   :  { %2808 = vmatpush1.bf16.msra.mxu1 %v5129_v36  ;;  %2768 = vmatprep.subr.bf16.mxu0 %v5134_v37 }
 0x34a   :  { %2809 = vmatprep.subr.bf16.mxu1 %v5137_v39 }
 0x34c   :  { %2769 = vmatpush1.bf16.msra.mxu0 %v5132_v40 }
 0x34d   :  { %2810 = vmatpush1.bf16.msra.mxu1 %v5135_v32  ;;  %2770 = vmatprep.subr.bf16.mxu0 %v5140_v6 }
 0x34e   :  { %2811 = vmatprep.subr.bf16.mxu1 %v5143_v42 }
 0x350   :  { %2771 = vmatpush1.bf16.msra.mxu0 %v5138_v29 }
 0x351   :  { %2812 = vmatpush1.bf16.msra.mxu1 %v5141_v43  ;;  %2772 = vmatprep.subr.bf16.mxu0 %v5146_v45 }
 0x352   :  { %2813 = vmatprep.subr.bf16.mxu1 %v5149_v49 }
 0x354   :  { %2773 = vmatpush1.bf16.msra.mxu0 %v5144_v51 }
 0x355   :  { %2814 = vmatpush1.bf16.msra.mxu1 %v5147_v52  ;;  %2774 = vmatprep.subr.bf16.mxu0 %v5152_v53 }
 0x356   :  { %2815 = vmatprep.subr.bf16.mxu1 %v5155_v20 }
 0x358   :  { %2775 = vmatpush1.bf16.msra.mxu0 %v5150_v11 }
 0x359   :  { %2816 = vmatpush1.bf16.msra.mxu1 %v5153_v54  ;;  %2776 = vmatprep.subr.bf16.mxu0 %v5158_v5 }
 0x35a   :  { %2817 = vmatprep.subr.bf16.mxu1 %v5161_v21 }
 0x35c   :  { %2777 = vmatpush2.bf16.msra.mxu0 %v5156_v12 }
 0x35d   :  { %2818 = vmatpush2.bf16.msra.mxu1 %v5159_v18  ;;  %2778 = vmatprep.subr.bf16.mxu0 %v5164_v55 }
 0x35e   :  { %2819 = vmatprep.subr.bf16.mxu1 %v5167_v41 }
 0x360   :  { %2779 = vmatpush2.bf16.msra.mxu0 %v5162_v50 }
 0x361   :  { %2820 = vmatpush2.bf16.msra.mxu1 %v5165_v56  ;;  %2780 = vmatprep.subr.bf16.mxu0 %v5170_v58 }
 0x362   :  { %2821 = vmatprep.subr.bf16.mxu1 %v5173_v60 }
 0x364   :  { %2781 = vmatpush2.bf16.msra.mxu0 %v5168_v61 }
 0x365   :  { %2822 = vmatpush2.bf16.msra.mxu1 %v5171_v62  ;;  %2782 = vmatprep.subr.bf16.mxu0 %v5176_v63 }
 0x366   :  { %2823 = vmatprep.subr.bf16.mxu1 %v5179_v0 }
 0x368   :  { %2783 = vmatpush2.bf16.msra.mxu0 %v5174_v1 }
 0x369   :  { %2824 = vmatpush2.bf16.msra.mxu1 %v5177_v2  ;;  %2784 = vmatprep.subr.bf16.mxu0 %v5182_v8 }
 0x36a   :  { %2825 = vmatprep.subr.bf16.mxu1 %v5185_v57 }
 0x36c   :  { %2785 = vmatpush2.bf16.msra.mxu0 %v5180_v59 }
 0x36d   :  { %2826 = vmatpush2.bf16.msra.mxu1 %v5183_v7  ;;  %2786 = vmatprep.subr.bf16.mxu0 %v5188_v9 }
 0x36e   :  { %2827 = vmatprep.subr.bf16.mxu1 %v5191_v13 }
 0x370   :  { %2787 = vmatpush2.bf16.msra.mxu0 %v5186_v14 }
 0x371   :  { %2828 = vmatpush2.bf16.msra.mxu1 %v5189_v15  ;;  %2788 = vmatprep.subr.bf16.mxu0 %v5194_v16 }
 0x372   :  { %2829 = vmatprep.subr.bf16.mxu1 %v5197_v17 }
 0x374   :  { %2789 = vmatpush2.bf16.msra.mxu0 %v5192_v4 }
 0x375   :  { %2830 = vmatpush2.bf16.msra.mxu1 %v5195_v19  ;;  %2790 = vmatprep.subr.bf16.mxu0 %v5200_v10 }
 0x376   :  { %2831 = vmatprep.subr.bf16.mxu1 %v5203_v22 }
 0x378   :  { %2791 = vmatpush2.bf16.msra.mxu0 %v5198_v23 }
 0x379   :  { %2832 = vmatpush2.bf16.msra.mxu1 %v5201_v24 }
 0x37b   :  { %2793 = vmatmul.mubr.bf16.vlgmr.msra.gmra.mxu0 %v5726_v3 }
 0x37c   :  { %2834 = vmatmul.mubr.bf16.vlgmr.msra.gmra.mxu1 %v5730_v38 }
 0x3fb   :  { %v2712_v25 = vpop.f32.mrf.mxu0 }
 0x3fc   :  { %v2753_v26 = vpop.f32.mrf.mxu1 }
 0x3fd   :  { %v5742_v27 = vadd.f32 %v2753_v26, %v2712_v25  ;;  %v2714_v28 = vpop.f32.mrf.mxu0 }
 0x3fe   :  { %v2755_v30 = vpop.f32.mrf.mxu1 }
 0x3ff   :  { %v2842_v31 = vrot.slane %v5742_v27, 4  ;;  %v2866_v33 = vmul.f32 %v5742_v27, %v5742_v27  ;;  %v5747_v34 = vadd.f32 %v2755_v30, %v2714_v28  ;;  %v2716_v36 = vpop.f32.mrf.mxu0 }
 0x400   :  { %v2757_v37 = vpop.f32.mrf.mxu1 }
 0x401   :  { %v2843_v39 = vadd.f32 %v2842_v31, %v5742_v27  ;;  %v2870_v3 = vrot.slane %v2866_v33, 4  ;;  %v2848_v38 = vrot.slane %v5747_v34, 4  ;;  %v2867_v40 = vmul.f32 %v5747_v34, %v5747_v34  ;;  %v2717_v32 = vpop.f32.mrf.mxu0 }
 0x402   :  { %v2758_v6 = vpop.f32.mrf.mxu1 }
 0x403   :  { %v2844_v42 = vrot.slane %v2843_v39, 2  ;;  %v2871_v29 = vadd.f32 %v2870_v3, %v2866_v33  ;;  %v2849_v43 = vadd.f32 %v2848_v38, %v5747_v34  ;;  %v2876_v45 = vrot.slane %v2867_v40, 4 }
 0x405   :  { %v2845_v49 = vadd.f32 %v2844_v42, %v2843_v39  ;;  %v2872_v51 = vrot.slane %v2871_v29, 2  ;;  %v2850_v52 = vrot.slane %v2849_v43, 2  ;;  %v2877_v53 = vadd.f32 %v2876_v45, %v2867_v40 }
 0x407   :  { %v2846_v20 = vrot.slane %v2845_v49, 1  ;;  %v2873_v11 = vadd.f32 %v2872_v51, %v2871_v29  ;;  %v2851_v54 = vadd.f32 %v2850_v52, %v2849_v43  ;;  %v2878_v5 = vrot.slane %v2877_v53, 2 }
 0x409   :  { %v2847_v21 = vadd.f32 %v2846_v20, %v2845_v49  ;;  %v2874_v12 = vrot.slane %v2873_v11, 1  ;;  %v2852_v18 = vrot.slane %v2851_v54, 1  ;;  %v2879_v55 = vadd.f32 %v2878_v5, %v2877_v53 }
 0x40b   :  { %v2875_v41 = vadd.f32 %v2874_v12, %v2873_v11  ;;  %v5754_v50 = vmul.f32 0.125, %v2847_v21  ;;  %v2853_v56 = vadd.f32 %v2852_v18, %v2851_v54  ;;  %v2880_v58 = vrot.slane %v2879_v55, 1 }
 0x40d   :  { %v2898_v60 = vmul.f32 0.125, %v2875_v41  ;;  %v2902_v61 = vmul.f32 %v5754_v50, %v5754_v50  ;;  %v2881_v62 = vadd.f32 %v2880_v58, %v2879_v55  ;;  %v5758_v63 = vmul.f32 0.125, %v2853_v56 }
 0x40f   :  { %v2906_v0 = vsub.f32 %v2898_v60, %v2902_v61  ;;  %v2899_v1 = vmul.f32 0.125, %v2881_v62  ;;  %v2903_v2 = vmul.f32 %v5758_v63, %v5758_v63 }
 0x411   :  { %v2910_v8 = vmax.f32 %v2906_v0, 0.0  ;;  %v2907_v57 = vsub.f32 %v2899_v1, %v2903_v2 }
 0x413   :  { %v2918_v59 = vadd.f32 1e-05, %v2910_v8  ;;  %v2911_v7 = vmax.f32 %v2907_v57, 0.0 }
 0x415   :  { %v2919_v9 = vadd.f32 1e-05, %v2911_v7  ;;  %5204 = vrsqrt.f32 %v2918_v59 }
 0x417   :  { %5206 = vrsqrt.f32 %v2919_v9 }
 0x422   :  { %v5205_v13 = vpop.eup %5204 }
 0x424   :  { %v5207_v14 = vpop.eup %5206 }
 0x425   :  { %v2930_v15 = vcombine.low %v5205_v13, %v5207_v14 }
 0x427   :  { %v2938_v9 = vrot.slane %v2930_v15, %v5630_v35 }
 0x43b   :  { %v2794_v16 = vpop.f32.mrf.mxu0 }
 0x43c   :  { %v2835_v17 = vpop.f32.mrf.mxu1 }
 0x43d   :  { %v5762_v4 = vadd.f32 %v2835_v17, %v2794_v16  ;;  %v2796_v19 = vpop.f32.mrf.mxu0  ;;  %v2915_v16 = vld [vmem:[#allocation10 + $0x4] ss:$8 sm:$0xf] }
 0x43e   :  { %v2837_v10 = vpop.f32.mrf.mxu1 }
 0x43f   :  { %v2854_v22 = vrot.slane %v5762_v4, 4  ;;  %v2868_v23 = vmul.f32 %v5762_v4, %v5762_v4  ;;  %v5767_v24 = vadd.f32 %v2837_v10, %v2796_v19  ;;  %v2798_v25 = vpop.f32.mrf.mxu0 }
 0x440   :  { %v2839_v26 = vpop.f32.mrf.mxu1 }
 0x441   :  { %v2855_v28 = vadd.f32 %v2854_v22, %v5762_v4  ;;  %v2882_v30 = vrot.slane %v2868_v23, 4  ;;  %v2860_v31 = vrot.slane %v5767_v24, 4  ;;  %v2869_v33 = vmul.f32 %v5767_v24, %v5767_v24  ;;  %v2799_v36 = vpop.f32.mrf.mxu0 }
 0x442   :  { %v2840_v37 = vpop.f32.mrf.mxu1 }
 0x443   :  { %v2856_v39 = vrot.slane %v2855_v28, 2  ;;  %v2883_v3 = vadd.f32 %v2882_v30, %v2868_v23  ;;  %v2861_v38 = vadd.f32 %v2860_v31, %v5767_v24  ;;  %v2888_v40 = vrot.slane %v2869_v33, 4 }
 0x445   :  { %v2857_v32 = vadd.f32 %v2856_v39, %v2855_v28  ;;  %v2884_v6 = vrot.slane %v2883_v3, 2  ;;  %v2862_v42 = vrot.slane %v2861_v38, 2  ;;  %v2889_v29 = vadd.f32 %v2888_v40, %v2869_v33  ;;  %v2917_v40 = vld [vmem:[#allocation10 + $0x5] ss:$8 sm:$0xf] }
 0x447   :  { %v2858_v43 = vrot.slane %v2857_v32, 1  ;;  %v2885_v45 = vadd.f32 %v2884_v6, %v2883_v3  ;;  %v2863_v49 = vadd.f32 %v2862_v42, %v2861_v38  ;;  %v2890_v51 = vrot.slane %v2889_v29, 2 }
 0x449   :  { %v2859_v52 = vadd.f32 %v2858_v43, %v2857_v32  ;;  %v2886_v53 = vrot.slane %v2885_v45, 1  ;;  %v2864_v20 = vrot.slane %v2863_v49, 1  ;;  %v2891_v11 = vadd.f32 %v2890_v51, %v2889_v29 }
 0x44b   :  { %v2887_v54 = vadd.f32 %v2886_v53, %v2885_v45  ;;  %v2896_v5 = vmul.f32 0.125, %v2859_v52  ;;  %v2865_v21 = vadd.f32 %v2864_v20, %v2863_v49  ;;  %v2892_v12 = vrot.slane %v2891_v11, 1 }
 0x44d   :  { %v2900_v18 = vmul.f32 0.125, %v2887_v54  ;;  %v2904_v55 = vmul.f32 %v2896_v5, %v2896_v5  ;;  %v2893_v41 = vadd.f32 %v2892_v12, %v2891_v11  ;;  %v2897_v56 = vmul.f32 0.125, %v2865_v21 }
 0x44f   :  { %v2908_v58 = vsub.f32 %v2900_v18, %v2904_v55  ;;  %v2901_v60 = vmul.f32 0.125, %v2893_v41  ;;  %v2905_v61 = vmul.f32 %v2897_v56, %v2897_v56 }
 0x451   :  { %v2912_v62 = vmax.f32 %v2908_v58, 0.0  ;;  %v2909_v0 = vsub.f32 %v2901_v60, %v2905_v61 }
 0x453   :  { %v2920_v1 = vadd.f32 1e-05, %v2912_v62  ;;  %v2913_v2 = vmax.f32 %v2909_v0, 0.0 }
 0x455   :  { %v2921_v8 = vadd.f32 1e-05, %v2913_v2  ;;  %5208 = vrsqrt.f32 %v2920_v1 }
 0x457   :  { %5210 = vrsqrt.f32 %v2921_v8 }
 0x462   :  { %v5209_v57 = vpop.eup %5208 }
 0x464   :  { %v5211_v59 = vpop.eup %5210 }
 0x465   :  { %v2931_v7 = vcombine.low %v5209_v57, %v5211_v59 }
 0x467   :  { %v2945_v13 = vrot.slane %v2931_v7, %v5630_v35 }
 0x469   :  { %v2946_v14 = vcombine.low %v2938_v9, %v2945_v13 }
 0x46b   :  { %v2953_v17 = vrot.slane %v2946_v14, %v5630_v35 }
 0x46d   :  { %v2955_v19 = vmul.f32 %v2953_v17, %v2915_v16 }
 0x46f   :  { %v2960_v10 = vrot.slane %v2955_v19, %v5634_v44  ;;  %v2964_v22 = vrot.slane %v2955_v19, %v5637_v46  ;;  %v2968_v23 = vrot.slane %v2955_v19, %v5639_v47  ;;  %v2972_v25 = vrot.slane %v2955_v19, %v5641_v48 }
 0x471   :  { %v2977_v26 = vmul.f32 %v2960_v10, %v5754_v50  ;;  %v2978_v28 = vmul.f32 %v2964_v22, %v5758_v63  ;;  %v2979_v15 = vmul.f32 %v2968_v23, %v2896_v5  ;;  %v2980_v30 = vmul.f32 %v2972_v25, %v2897_v56 }
 0x472   :  { %v3011_v31 = vmul.f32 %v2960_v10, %v5742_v27  ;;  %v3012_v33 = vmul.f32 %v2964_v22, %v5747_v34  ;;  %v3013_v50 = vmul.f32 %v2968_v23, %v5762_v4  ;;  %v3014_v63 = vmul.f32 %v2972_v25, %v5767_v24 }
 0x473   :  { %v2985_v36 = vcombine.low %v2977_v26, %v2978_v28  ;;  %v2986_v37 = vcombine.low %v2979_v15, %v2980_v30 }
 0x475   :  { %v2993_v39 = vrot.slane %v2985_v36, %v5630_v35  ;;  %v3000_v3 = vrot.slane %v2986_v37, %v5630_v35 }
 0x477   :  { %v3001_v38 = vcombine.low %v2993_v39, %v3000_v3 }
 0x479   :  { %v3008_v32 = vrot.slane %v3001_v38, %v5630_v35 }
 0x47b   :  { %v3010_v6 = vsub.f32 %v2917_v40, %v3008_v32 }
 0x47d   :  { %v3019_v42 = vrot.slane %v3010_v6, %v5634_v44  ;;  %v3023_v27 = vrot.slane %v3010_v6, %v5637_v46  ;;  %v3027_v34 = vrot.slane %v3010_v6, %v5639_v47  ;;  %v3031_v29 = vrot.slane %v3010_v6, %v5641_v48 }
 0x47f   :  { %v3036_v43 = vadd.f32 %v3019_v42, %v3011_v31  ;;  %v3037_v45 = vadd.f32 %v3023_v27, %v3012_v33  ;;  %v3038_v49 = vadd.f32 %v3027_v34, %v3013_v50  ;;  %v3039_v51 = vadd.f32 %v3031_v29, %v3014_v63 }
 0x481   :  { %v3040_v52 = vmax.f32 %v3036_v43, 0.0  ;;  %v3041_v53 = vmax.f32 %v3037_v45, 0.0  ;;  %v3042_v20 = vmax.f32 %v3038_v49, 0.0  ;;  %v3043_v11 = vmax.f32 %v3039_v51, 0.0 }
 0x483   :  { %v5794_v54 = vpack.c.bf16 %v3040_v52, %v3040_v52  ;;  %v5796_v4 = vpack.c.bf16 %v3041_v53, %v3041_v53  ;;  %v5798_v24 = vpack.c.bf16 %v3042_v20, %v3042_v20  ;;  %v5800_v5 = vpack.c.bf16 %v3043_v11, %v3043_v11 }
 0x484   :  { %5540 = dma.done.wait [#allocation5 + $0x2], 16384 }
 0x485   :  { %5541 = vsyncadd [#allocation5 + $0x2], 4294950912  ;;  %3850 = vmatprep.mubr.bf16.mxu0 %v5796_v4  ;;  %3891 = vmatprep.mubr.bf16.mxu1 %v5800_v5  ;;  %v5212_v21 = vld [vmem:[#allocation4 + $0xe4] ss:$16 sps:$4 sm:$0xff]   ;;  %v5216_v18 = vld [vmem:[#allocation4 + $0xe0] ss:$16 sps:$4 sm:$0xff]  }
 0x486   :  { %v5214_v12 = vld [vmem:[#allocation4 + $0x2e4] ss:$16 sps:$4 sm:$0xff]   ;;  %3818 = vmatprep.subr.bf16.mxu0 %v5212_v21  ;;  %v5217_v55 = vld [vmem:[#allocation4 + $0x2e0] ss:$16 sps:$4 sm:$0xff]   ;;  %vm4218_vm0 = vcmask 7168  }
 0x487   :  { %3859 = vmatprep.subr.bf16.mxu1 %v5214_v12  ;;  %v5218_v41 = vld [vmem:[#allocation4 + $0xc4] ss:$16 sps:$4 sm:$0xff]   ;;  %3819 = vmatpush1.bf16.msra.mxu0 %v5216_v18  ;;  %v5222_v58 = vld [vmem:[#allocation4 + $0xc0] ss:$16 sps:$4 sm:$0xff]  }
 0x488   :  { %3860 = vmatpush1.bf16.msra.mxu1 %v5217_v55  ;;  %v5220_v56 = vld [vmem:[#allocation4 + $0x2c4] ss:$16 sps:$4 sm:$0xff]   ;;  %3820 = vmatprep.subr.bf16.mxu0 %v5218_v41  ;;  %v5223_v60 = vld [vmem:[#allocation4 + $0x2c0] ss:$16 sps:$4 sm:$0xff]  }
 0x489   :  { %3861 = vmatprep.subr.bf16.mxu1 %v5220_v56  ;;  %v5224_v61 = vld [vmem:[#allocation4 + $0xa4] ss:$16 sps:$4 sm:$0xff]   ;;  %v5228_v0 = vld [vmem:[#allocation4 + $0xa0] ss:$16 sps:$4 sm:$0xff]  }
 0x48a   :  { %v5226_v62 = vld [vmem:[#allocation4 + $0x2a4] ss:$16 sps:$4 sm:$0xff]   ;;  %v5229_v1 = vld [vmem:[#allocation4 + $0x2a0] ss:$16 sps:$4 sm:$0xff]  }
 0x48b   :  { %3821 = vmatpush1.bf16.msra.mxu0 %v5222_v58  ;;  %v5230_v2 = vld [vmem:[#allocation4 + $0x84] ss:$16 sps:$4 sm:$0xff]   ;;  %v5234_v57 = vld [vmem:[#allocation4 + $0x80] ss:$16 sps:$4 sm:$0xff]  }
 0x48c   :  { %3862 = vmatpush1.bf16.msra.mxu1 %v5223_v60  ;;  %3822 = vmatprep.subr.bf16.mxu0 %v5224_v61  ;;  %v5232_v8 = vld [vmem:[#allocation4 + $0x284] ss:$16 sps:$4 sm:$0xff]   ;;  %v5235_v59 = vld [vmem:[#allocation4 + $0x280] ss:$16 sps:$4 sm:$0xff]  }
 0x48d   :  { %3863 = vmatprep.subr.bf16.mxu1 %v5226_v62  ;;  %v5236_v7 = vld [vmem:[#allocation4 + $0x64] ss:$16 sps:$4 sm:$0xff]   ;;  %v5240_v13 = vld [vmem:[#allocation4 + $0x60] ss:$16 sps:$4 sm:$0xff]   ;;  %v5310_v62 = vld [vmem:[#allocation4 + $0xec] ss:$16 sps:$4 sm:$0xff]  }
 0x48e   :  { %v5238_v9 = vld [vmem:[#allocation4 + $0x264] ss:$16 sps:$4 sm:$0xff]   ;;  %v5241_v14 = vld [vmem:[#allocation4 + $0x260] ss:$16 sps:$4 sm:$0xff]  }
 0x48f   :  { %3823 = vmatpush1.bf16.msra.mxu0 %v5228_v0  ;;  %v5242_v16 = vld [vmem:[#allocation4 + $0x44] ss:$16 sps:$4 sm:$0xff]   ;;  %v5246_v19 = vld [vmem:[#allocation4 + $0x40] ss:$16 sps:$4 sm:$0xff]   ;;  %v5313_v0 = vld [vmem:[#allocation4 + $0x2ec] ss:$16 sps:$4 sm:$0xff]  }
 0x490   :  { %3864 = vmatpush1.bf16.msra.mxu1 %v5229_v1  ;;  %3824 = vmatprep.subr.bf16.mxu0 %v5230_v2  ;;  %v5244_v17 = vld [vmem:[#allocation4 + $0x244] ss:$16 sps:$4 sm:$0xff]   ;;  %v5247_v10 = vld [vmem:[#allocation4 + $0x240] ss:$16 sps:$4 sm:$0xff]   ;;  %v5308_v1 = vld [vmem:[#allocation4 + $0xe8] ss:$16 sps:$4 sm:$0xff]  }
 0x491   :  { %3865 = vmatprep.subr.bf16.mxu1 %v5232_v8  ;;  %v5248_v22 = vld [vmem:[#allocation4 + $0x24] ss:$16 sps:$4 sm:$0xff]   ;;  %v5252_v25 = vld [vmem:[#allocation4 + $0x20] ss:$16 sps:$4 sm:$0xff]   ;;  %v5311_v2 = vld [vmem:[#allocation4 + $0x2e8] ss:$16 sps:$4 sm:$0xff]  }
 0x492   :  { %v5250_v23 = vld [vmem:[#allocation4 + $0x224] ss:$16 sps:$4 sm:$0xff]   ;;  %v5253_v26 = vld [vmem:[#allocation4 + $0x220] ss:$16 sps:$4 sm:$0xff]   ;;  %v5316_v8 = vld [vmem:[#allocation4 + $0xcc] ss:$16 sps:$4 sm:$0xff]  }
 0x493   :  { %3825 = vmatpush1.bf16.msra.mxu0 %v5234_v57  ;;  %v5254_v28 = vld [vmem:[#allocation4 + $0x4] ss:$16 sps:$4 sm:$0xff]   ;;  %v5258_v30 = vld [vmem:[#allocation4] ss:$16 sps:$4 sm:$0xff]   ;;  %v5319_v57 = vld [vmem:[#allocation4 + $0x2cc] ss:$16 sps:$4 sm:$0xff]  }
 0x494   :  { %3866 = vmatpush1.bf16.msra.mxu1 %v5235_v59  ;;  %3826 = vmatprep.subr.bf16.mxu0 %v5236_v7  ;;  %v5256_v15 = vld [vmem:[#allocation4 + $0x204] ss:$16 sps:$4 sm:$0xff]   ;;  %v5259_v31 = vld [vmem:[#allocation4 + $0x200] ss:$16 sps:$4 sm:$0xff]   ;;  %v5314_v59 = vld [vmem:[#allocation4 + $0xc8] ss:$16 sps:$4 sm:$0xff]  }
 0x495   :  { %3867 = vmatprep.subr.bf16.mxu1 %v5238_v9  ;;  %v5260_v33 = vld [vmem:[#allocation4 + $0x1e4] ss:$16 sps:$4 sm:$0xff]   ;;  %v5264_v37 = vld [vmem:[#allocation4 + $0x1e0] ss:$16 sps:$4 sm:$0xff]   ;;  %v5317_v7 = vld [vmem:[#allocation4 + $0x2c8] ss:$16 sps:$4 sm:$0xff]  }
 0x496   :  { %v5262_v36 = vld [vmem:[#allocation4 + $0x3e4] ss:$16 sps:$4 sm:$0xff]   ;;  %v5265_v39 = vld [vmem:[#allocation4 + $0x3e0] ss:$16 sps:$4 sm:$0xff]   ;;  %v5322_v9 = vld [vmem:[#allocation4 + $0xac] ss:$16 sps:$4 sm:$0xff]  }
 0x497   :  { %3827 = vmatpush1.bf16.msra.mxu0 %v5240_v13  ;;  %v5266_v3 = vld [vmem:[#allocation4 + $0x1c4] ss:$16 sps:$4 sm:$0xff]   ;;  %v5270_v40 = vld [vmem:[#allocation4 + $0x1c0] ss:$16 sps:$4 sm:$0xff]   ;;  %v5325_v13 = vld [vmem:[#allocation4 + $0x2ac] ss:$16 sps:$4 sm:$0xff]  }
 0x498   :  { %3868 = vmatpush1.bf16.msra.mxu1 %v5241_v14  ;;  %3828 = vmatprep.subr.bf16.mxu0 %v5242_v16  ;;  %v5268_v38 = vld [vmem:[#allocation4 + $0x3c4] ss:$16 sps:$4 sm:$0xff]   ;;  %v5271_v32 = vld [vmem:[#allocation4 + $0x3c0] ss:$16 sps:$4 sm:$0xff]   ;;  %v5320_v14 = vld [vmem:[#allocation4 + $0xa8] ss:$16 sps:$4 sm:$0xff]  }
 0x499   :  { %3869 = vmatprep.subr.bf16.mxu1 %v5244_v17  ;;  %v5272_v6 = vld [vmem:[#allocation4 + $0x1a4] ss:$16 sps:$4 sm:$0xff]   ;;  %v5276_v63 = vld [vmem:[#allocation4 + $0x1a0] ss:$16 sps:$4 sm:$0xff]   ;;  %v5323_v16 = vld [vmem:[#allocation4 + $0x2a8] ss:$16 sps:$4 sm:$0xff]  }
 0x49a   :  { %v5274_v50 = vld [vmem:[#allocation4 + $0x3a4] ss:$16 sps:$4 sm:$0xff]   ;;  %v5277_v42 = vld [vmem:[#allocation4 + $0x3a0] ss:$16 sps:$4 sm:$0xff]   ;;  %v5328_v17 = vld [vmem:[#allocation4 + $0x8c] ss:$16 sps:$4 sm:$0xff]  }
 0x49b   :  { %3829 = vmatpush1.bf16.msra.mxu0 %v5246_v19  ;;  %v5278_v27 = vld [vmem:[#allocation4 + $0x184] ss:$16 sps:$4 sm:$0xff]   ;;  %v5282_v29 = vld [vmem:[#allocation4 + $0x180] ss:$16 sps:$4 sm:$0xff]   ;;  %v5331_v19 = vld [vmem:[#allocation4 + $0x28c] ss:$16 sps:$4 sm:$0xff]  }
 0x49c   :  { %3870 = vmatpush1.bf16.msra.mxu1 %v5247_v10  ;;  %3830 = vmatprep.subr.bf16.mxu0 %v5248_v22  ;;  %v5280_v34 = vld [vmem:[#allocation4 + $0x384] ss:$16 sps:$4 sm:$0xff]   ;;  %v5283_v43 = vld [vmem:[#allocation4 + $0x380] ss:$16 sps:$4 sm:$0xff]   ;;  %v5326_v10 = vld [vmem:[#allocation4 + $0x88] ss:$16 sps:$4 sm:$0xff]  }
 0x49d   :  { %3871 = vmatprep.subr.bf16.mxu1 %v5250_v23  ;;  %v5284_v45 = vld [vmem:[#allocation4 + $0x164] ss:$16 sps:$4 sm:$0xff]   ;;  %v5288_v51 = vld [vmem:[#allocation4 + $0x160] ss:$16 sps:$4 sm:$0xff]   ;;  %v5329_v22 = vld [vmem:[#allocation4 + $0x288] ss:$16 sps:$4 sm:$0xff]  }
 0x49e   :  { %v5286_v49 = vld [vmem:[#allocation4 + $0x364] ss:$16 sps:$4 sm:$0xff]   ;;  %v5289_v52 = vld [vmem:[#allocation4 + $0x360] ss:$16 sps:$4 sm:$0xff]   ;;  %v5334_v23 = vld [vmem:[#allocation4 + $0x6c] ss:$16 sps:$4 sm:$0xff]  }
 0x49f   :  { %3831 = vmatpush1.bf16.msra.mxu0 %v5252_v25  ;;  %v5290_v53 = vld [vmem:[#allocation4 + $0x144] ss:$16 sps:$4 sm:$0xff]   ;;  %v5294_v11 = vld [vmem:[#allocation4 + $0x140] ss:$16 sps:$4 sm:$0xff]   ;;  %v5337_v25 = vld [vmem:[#allocation4 + $0x26c] ss:$16 sps:$4 sm:$0xff]  }
 0x4a0   :  { %3872 = vmatpush1.bf16.msra.mxu1 %v5253_v26  ;;  %3832 = vmatprep.subr.bf16.mxu0 %v5254_v28  ;;  %v5292_v20 = vld [vmem:[#allocation4 + $0x344] ss:$16 sps:$4 sm:$0xff]   ;;  %v5295_v21 = vld [vmem:[#allocation4 + $0x340] ss:$16 sps:$4 sm:$0xff]   ;;  %v5332_v26 = vld [vmem:[#allocation4 + $0x68] ss:$16 sps:$4 sm:$0xff]  }
 0x4a1   :  { %3873 = vmatprep.subr.bf16.mxu1 %v5256_v15  ;;  %v5296_v12 = vld [vmem:[#allocation4 + $0x124] ss:$16 sps:$4 sm:$0xff]   ;;  %v5300_v55 = vld [vmem:[#allocation4 + $0x120] ss:$16 sps:$4 sm:$0xff]   ;;  %v5343_v28 = vld [vmem:[#allocation4 + $0x24c] ss:$16 sps:$4 sm:$0xff]  }
 0x4a2   :  { %v5298_v18 = vld [vmem:[#allocation4 + $0x324] ss:$16 sps:$4 sm:$0xff]   ;;  %v5301_v41 = vld [vmem:[#allocation4 + $0x320] ss:$16 sps:$4 sm:$0xff]   ;;  %v5338_v15 = vld [vmem:[#allocation4 + $0x48] ss:$16 sps:$4 sm:$0xff]  }
 0x4a3   :  { %3833 = vmatpush1.bf16.msra.mxu0 %v5258_v30  ;;  %v5302_v56 = vld [vmem:[#allocation4 + $0x104] ss:$16 sps:$4 sm:$0xff]   ;;  %v5306_v60 = vld [vmem:[#allocation4 + $0x100] ss:$16 sps:$4 sm:$0xff]   ;;  %v5341_v30 = vld [vmem:[#allocation4 + $0x248] ss:$16 sps:$4 sm:$0xff]  }
 0x4a4   :  { %3874 = vmatpush1.bf16.msra.mxu1 %v5259_v31  ;;  %3834 = vmatprep.subr.bf16.mxu0 %v5260_v33  ;;  %v5304_v58 = vld [vmem:[#allocation4 + $0x304] ss:$16 sps:$4 sm:$0xff]   ;;  %v5307_v61 = vld [vmem:[#allocation4 + $0x300] ss:$16 sps:$4 sm:$0xff]   ;;  %v5346_v31 = vld [vmem:[#allocation4 + $0x2c] ss:$16 sps:$4 sm:$0xff]  }
 0x4a5   :  { %3875 = vmatprep.subr.bf16.mxu1 %v5262_v36  ;;  %v5349_v33 = vld [vmem:[#allocation4 + $0x22c] ss:$16 sps:$4 sm:$0xff]   ;;  %v5344_v36 = vld [vmem:[#allocation4 + $0x28] ss:$16 sps:$4 sm:$0xff]  }
 0x4a7   :  { %3835 = vmatpush2.bf16.msra.mxu0 %v5264_v37  ;;  %v5347_v37 = vld [vmem:[#allocation4 + $0x228] ss:$16 sps:$4 sm:$0xff]  }
 0x4a8   :  { %3876 = vmatpush2.bf16.msra.mxu1 %v5265_v39  ;;  %3836 = vmatprep.subr.bf16.mxu0 %v5266_v3  ;;  %v5352_v39 = vld [vmem:[#allocation4 + $0xc] ss:$16 sps:$4 sm:$0xff]  }
 0x4a9   :  { %3877 = vmatprep.subr.bf16.mxu1 %v5268_v38  ;;  %v5355_v3 = vld [vmem:[#allocation4 + $0x20c] ss:$16 sps:$4 sm:$0xff]   ;;  %v5350_v38 = vld [vmem:[#allocation4 + $0x8] ss:$16 sps:$4 sm:$0xff]  }
 0x4ab   :  { %3837 = vmatpush2.bf16.msra.mxu0 %v5270_v40  ;;  %v5353_v40 = vld [vmem:[#allocation4 + $0x208] ss:$16 sps:$4 sm:$0xff]  }
 0x4ac   :  { %3878 = vmatpush2.bf16.msra.mxu1 %v5271_v32  ;;  %3838 = vmatprep.subr.bf16.mxu0 %v5272_v6  ;;  %v5358_v32 = vld [vmem:[#allocation4 + $0x1ec] ss:$16 sps:$4 sm:$0xff]  }
 0x4ad   :  { %3879 = vmatprep.subr.bf16.mxu1 %v5274_v50  ;;  %v5361_v6 = vld [vmem:[#allocation4 + $0x3ec] ss:$16 sps:$4 sm:$0xff]   ;;  %v5356_v50 = vld [vmem:[#allocation4 + $0x1e8] ss:$16 sps:$4 sm:$0xff]  }
 0x4af   :  { %3839 = vmatpush2.bf16.msra.mxu0 %v5276_v63  ;;  %v5359_v63 = vld [vmem:[#allocation4 + $0x3e8] ss:$16 sps:$4 sm:$0xff]  }
 0x4b0   :  { %3880 = vmatpush2.bf16.msra.mxu1 %v5277_v42  ;;  %3840 = vmatprep.subr.bf16.mxu0 %v5278_v27  ;;  %v5364_v42 = vld [vmem:[#allocation4 + $0x1cc] ss:$16 sps:$4 sm:$0xff]  }
 0x4b1   :  { %3881 = vmatprep.subr.bf16.mxu1 %v5280_v34  ;;  %v5367_v27 = vld [vmem:[#allocation4 + $0x3cc] ss:$16 sps:$4 sm:$0xff]   ;;  %v5362_v34 = vld [vmem:[#allocation4 + $0x1c8] ss:$16 sps:$4 sm:$0xff]  }
 0x4b3   :  { %3841 = vmatpush2.bf16.msra.mxu0 %v5282_v29  ;;  %v5365_v29 = vld [vmem:[#allocation4 + $0x3c8] ss:$16 sps:$4 sm:$0xff]  }
 0x4b4   :  { %3882 = vmatpush2.bf16.msra.mxu1 %v5283_v43  ;;  %3842 = vmatprep.subr.bf16.mxu0 %v5284_v45  ;;  %v5370_v43 = vld [vmem:[#allocation4 + $0x1ac] ss:$16 sps:$4 sm:$0xff]  }
 0x4b5   :  { %3883 = vmatprep.subr.bf16.mxu1 %v5286_v49  ;;  %v5373_v45 = vld [vmem:[#allocation4 + $0x3ac] ss:$16 sps:$4 sm:$0xff]   ;;  %v5368_v49 = vld [vmem:[#allocation4 + $0x1a8] ss:$16 sps:$4 sm:$0xff]  }
 0x4b7   :  { %3843 = vmatpush2.bf16.msra.mxu0 %v5288_v51  ;;  %v5371_v51 = vld [vmem:[#allocation4 + $0x3a8] ss:$16 sps:$4 sm:$0xff]  }
 0x4b8   :  { %3884 = vmatpush2.bf16.msra.mxu1 %v5289_v52  ;;  %3844 = vmatprep.subr.bf16.mxu0 %v5290_v53  ;;  %v5376_v52 = vld [vmem:[#allocation4 + $0x18c] ss:$16 sps:$4 sm:$0xff]  }
 0x4b9   :  { %3885 = vmatprep.subr.bf16.mxu1 %v5292_v20  ;;  %v5379_v53 = vld [vmem:[#allocation4 + $0x38c] ss:$16 sps:$4 sm:$0xff]   ;;  %v5374_v20 = vld [vmem:[#allocation4 + $0x188] ss:$16 sps:$4 sm:$0xff]  }
 0x4bb   :  { %3845 = vmatpush2.bf16.msra.mxu0 %v5294_v11  ;;  %v5377_v11 = vld [vmem:[#allocation4 + $0x388] ss:$16 sps:$4 sm:$0xff]  }
 0x4bc   :  { %3886 = vmatpush2.bf16.msra.mxu1 %v5295_v21  ;;  %3846 = vmatprep.subr.bf16.mxu0 %v5296_v12  ;;  %v5382_v21 = vld [vmem:[#allocation4 + $0x16c] ss:$16 sps:$4 sm:$0xff]  }
 0x4bd   :  { %3887 = vmatprep.subr.bf16.mxu1 %v5298_v18  ;;  %v5385_v12 = vld [vmem:[#allocation4 + $0x36c] ss:$16 sps:$4 sm:$0xff]   ;;  %v5380_v18 = vld [vmem:[#allocation4 + $0x168] ss:$16 sps:$4 sm:$0xff]  }
 0x4bf   :  { %3847 = vmatpush2.bf16.msra.mxu0 %v5300_v55  ;;  %v5383_v55 = vld [vmem:[#allocation4 + $0x368] ss:$16 sps:$4 sm:$0xff]  }
 0x4c0   :  { %3888 = vmatpush2.bf16.msra.mxu1 %v5301_v41  ;;  %3848 = vmatprep.subr.bf16.mxu0 %v5302_v56  ;;  %v5388_v41 = vld [vmem:[#allocation4 + $0x14c] ss:$16 sps:$4 sm:$0xff]  }
 0x4c1   :  { %3889 = vmatprep.subr.bf16.mxu1 %v5304_v58  ;;  %v5391_v56 = vld [vmem:[#allocation4 + $0x34c] ss:$16 sps:$4 sm:$0xff]   ;;  %v5386_v58 = vld [vmem:[#allocation4 + $0x148] ss:$16 sps:$4 sm:$0xff]  }
 0x4c3   :  { %3849 = vmatpush2.bf16.msra.mxu0 %v5306_v60  ;;  %v5389_v60 = vld [vmem:[#allocation4 + $0x348] ss:$16 sps:$4 sm:$0xff]  }
 0x4c4   :  { %3890 = vmatpush2.bf16.msra.mxu1 %v5307_v61  ;;  %3900 = vmatprep.subr.bf16.mxu0 %v5310_v62  ;;  %v5394_v61 = vld [vmem:[#allocation4 + $0x12c] ss:$16 sps:$4 sm:$0xff]  }
 0x4c5   :  { %3941 = vmatprep.subr.bf16.mxu1 %v5313_v0  ;;  %v5397_v62 = vld [vmem:[#allocation4 + $0x32c] ss:$16 sps:$4 sm:$0xff]   ;;  %v5392_v0 = vld [vmem:[#allocation4 + $0x128] ss:$16 sps:$4 sm:$0xff]  }
 0x4c6   :  { %3851 = vmatmul.mubr.bf16.vlgmr.msra.gmra.mxu0 %v5794_v54 }
 0x4c7   :  { %3892 = vmatmul.mubr.bf16.vlgmr.msra.gmra.mxu1 %v5798_v24  ;;  %3901 = vmatpush1.bf16.msra.mxu0 %v5308_v1  ;;  %v5395_v1 = vld [vmem:[#allocation4 + $0x328] ss:$16 sps:$4 sm:$0xff]  }
 0x4c8   :  { %3942 = vmatpush1.bf16.msra.mxu1 %v5311_v2  ;;  %3902 = vmatprep.subr.bf16.mxu0 %v5316_v8  ;;  %v5400_v2 = vld [vmem:[#allocation4 + $0x10c] ss:$16 sps:$4 sm:$0xff]  }
 0x4c9   :  { %3943 = vmatprep.subr.bf16.mxu1 %v5319_v57  ;;  %3932 = vmatprep.mubr.bf16.mxu0 %v5796_v4  ;;  %v5335_v4 = vld [vmem:[#allocation4 + $0x268] ss:$16 sps:$4 sm:$0xff]   ;;  %v5403_v8 = vld [vmem:[#allocation4 + $0x30c] ss:$16 sps:$4 sm:$0xff]  }
 0x4ca   :  { %3973 = vmatprep.mubr.bf16.mxu1 %v5800_v5  ;;  %v5340_v5 = vld [vmem:[#allocation4 + $0x4c] ss:$16 sps:$4 sm:$0xff]   ;;  %v5398_v57 = vld [vmem:[#allocation4 + $0x108] ss:$16 sps:$4 sm:$0xff]  }
 0x4cb   :  { %3903 = vmatpush1.bf16.msra.mxu0 %v5314_v59  ;;  %v5401_v59 = vld [vmem:[#allocation4 + $0x308] ss:$16 sps:$4 sm:$0xff]  }
 0x4cc   :  { %3944 = vmatpush1.bf16.msra.mxu1 %v5317_v7  ;;  %3904 = vmatprep.subr.bf16.mxu0 %v5322_v9 }
 0x4cd   :  { %3945 = vmatprep.subr.bf16.mxu1 %v5325_v13 }
 0x4cf   :  { %3905 = vmatpush1.bf16.msra.mxu0 %v5320_v14 }
 0x4d0   :  { %3946 = vmatpush1.bf16.msra.mxu1 %v5323_v16  ;;  %3906 = vmatprep.subr.bf16.mxu0 %v5328_v17 }
 0x4d1   :  { %3947 = vmatprep.subr.bf16.mxu1 %v5331_v19 }
 0x4d3   :  { %3907 = vmatpush1.bf16.msra.mxu0 %v5326_v10 }
 0x4d4   :  { %3948 = vmatpush1.bf16.msra.mxu1 %v5329_v22  ;;  %3908 = vmatprep.subr.bf16.mxu0 %v5334_v23 }
 0x4d5   :  { %3949 = vmatprep.subr.bf16.mxu1 %v5337_v25 }
 0x4d7   :  { %3909 = vmatpush1.bf16.msra.mxu0 %v5332_v26 }
 0x4d8   :  { %3950 = vmatpush1.bf16.msra.mxu1 %v5335_v4  ;;  %3910 = vmatprep.subr.bf16.mxu0 %v5340_v5 }
 0x4d9   :  { %3951 = vmatprep.subr.bf16.mxu1 %v5343_v28 }
 0x4db   :  { %3911 = vmatpush1.bf16.msra.mxu0 %v5338_v15 }
 0x4dc   :  { %3952 = vmatpush1.bf16.msra.mxu1 %v5341_v30  ;;  %3912 = vmatprep.subr.bf16.mxu0 %v5346_v31 }
 0x4dd   :  { %3953 = vmatprep.subr.bf16.mxu1 %v5349_v33 }
 0x4df   :  { %3913 = vmatpush1.bf16.msra.mxu0 %v5344_v36 }
 0x4e0   :  { %3954 = vmatpush1.bf16.msra.mxu1 %v5347_v37  ;;  %3914 = vmatprep.subr.bf16.mxu0 %v5352_v39 }
 0x4e1   :  { %3955 = vmatprep.subr.bf16.mxu1 %v5355_v3 }
 0x4e3   :  { %3915 = vmatpush1.bf16.msra.mxu0 %v5350_v38 }
 0x4e4   :  { %3956 = vmatpush1.bf16.msra.mxu1 %v5353_v40  ;;  %3916 = vmatprep.subr.bf16.mxu0 %v5358_v32 }
 0x4e5   :  { %3957 = vmatprep.subr.bf16.mxu1 %v5361_v6 }
 0x4e7   :  { %3917 = vmatpush2.bf16.msra.mxu0 %v5356_v50 }
 0x4e8   :  { %3958 = vmatpush2.bf16.msra.mxu1 %v5359_v63  ;;  %3918 = vmatprep.subr.bf16.mxu0 %v5364_v42 }
 0x4e9   :  { %3959 = vmatprep.subr.bf16.mxu1 %v5367_v27 }
 0x4eb   :  { %3919 = vmatpush2.bf16.msra.mxu0 %v5362_v34 }
 0x4ec   :  { %3960 = vmatpush2.bf16.msra.mxu1 %v5365_v29  ;;  %3920 = vmatprep.subr.bf16.mxu0 %v5370_v43 }
 0x4ed   :  { %3961 = vmatprep.subr.bf16.mxu1 %v5373_v45 }
 0x4ef   :  { %3921 = vmatpush2.bf16.msra.mxu0 %v5368_v49 }
 0x4f0   :  { %3962 = vmatpush2.bf16.msra.mxu1 %v5371_v51  ;;  %3922 = vmatprep.subr.bf16.mxu0 %v5376_v52 }
 0x4f1   :  { %3963 = vmatprep.subr.bf16.mxu1 %v5379_v53 }
 0x4f3   :  { %3923 = vmatpush2.bf16.msra.mxu0 %v5374_v20 }
 0x4f4   :  { %3964 = vmatpush2.bf16.msra.mxu1 %v5377_v11  ;;  %3924 = vmatprep.subr.bf16.mxu0 %v5382_v21 }
 0x4f5   :  { %3965 = vmatprep.subr.bf16.mxu1 %v5385_v12 }
 0x4f7   :  { %3925 = vmatpush2.bf16.msra.mxu0 %v5380_v18 }
 0x4f8   :  { %3966 = vmatpush2.bf16.msra.mxu1 %v5383_v55  ;;  %3926 = vmatprep.subr.bf16.mxu0 %v5388_v41 }
 0x4f9   :  { %3967 = vmatprep.subr.bf16.mxu1 %v5391_v56 }
 0x4fb   :  { %3927 = vmatpush2.bf16.msra.mxu0 %v5386_v58 }
 0x4fc   :  { %3968 = vmatpush2.bf16.msra.mxu1 %v5389_v60  ;;  %3928 = vmatprep.subr.bf16.mxu0 %v5394_v61 }
 0x4fd   :  { %3969 = vmatprep.subr.bf16.mxu1 %v5397_v62 }
 0x4ff   :  { %3929 = vmatpush2.bf16.msra.mxu0 %v5392_v0 }
 0x500   :  { %3970 = vmatpush2.bf16.msra.mxu1 %v5395_v1  ;;  %3930 = vmatprep.subr.bf16.mxu0 %v5400_v2 }
 0x501   :  { %3971 = vmatprep.subr.bf16.mxu1 %v5403_v8 }
 0x503   :  { %3931 = vmatpush2.bf16.msra.mxu0 %v5398_v57 }
 0x504   :  { %3972 = vmatpush2.bf16.msra.mxu1 %v5401_v59 }
 0x506   :  { %3933 = vmatmul.mubr.bf16.vlgmr.msra.gmra.mxu0 %v5794_v54 }
 0x507   :  { %3974 = vmatmul.mubr.bf16.vlgmr.msra.gmra.mxu1 %v5798_v24 }
 0x586   :  { %v3852_v7 = vpop.f32.mrf.mxu0 }
 0x587   :  { %v3893_v9 = vpop.f32.mrf.mxu1 }
 0x588   :  { %v5810_v13 = vadd.f32 %v3893_v9, %v3852_v7  ;;  %v3854_v14 = vpop.f32.mrf.mxu0 }
 0x589   :  { %v3895_v16 = vpop.f32.mrf.mxu1 }
 0x58a   :  { %v3982_v17 = vrot.slane %v5810_v13, 4  ;;  %v4006_v19 = vmul.f32 %v5810_v13, %v5810_v13  ;;  %v5815_v10 = vadd.f32 %v3895_v16, %v3854_v14  ;;  %v3856_v22 = vpop.f32.mrf.mxu0 }
 0x58b   :  { %v3897_v23 = vpop.f32.mrf.mxu1 }
 0x58c   :  { %v3983_v25 = vadd.f32 %v3982_v17, %v5810_v13  ;;  %v4010_v54 = vrot.slane %v4006_v19, 4  ;;  %v3988_v24 = vrot.slane %v5815_v10, 4  ;;  %v4007_v26 = vmul.f32 %v5815_v10, %v5815_v10  ;;  %v3857_v4 = vpop.f32.mrf.mxu0 }
 0x58d   :  { %v3898_v5 = vpop.f32.mrf.mxu1 }
 0x58e   :  { %v3984_v28 = vrot.slane %v3983_v25, 2  ;;  %v4011_v15 = vadd.f32 %v4010_v54, %v4006_v19  ;;  %v3989_v30 = vadd.f32 %v3988_v24, %v5815_v10  ;;  %v4016_v31 = vrot.slane %v4007_v26, 4 }
 0x590   :  { %v3985_v33 = vadd.f32 %v3984_v28, %v3983_v25  ;;  %v4012_v36 = vrot.slane %v4011_v15, 2  ;;  %v3990_v37 = vrot.slane %v3989_v30, 2  ;;  %v4017_v39 = vadd.f32 %v4016_v31, %v4007_v26 }
 0x592   :  { %v3986_v3 = vrot.slane %v3985_v33, 1  ;;  %v4013_v38 = vadd.f32 %v4012_v36, %v4011_v15  ;;  %v3991_v40 = vadd.f32 %v3990_v37, %v3989_v30  ;;  %v4018_v32 = vrot.slane %v4017_v39, 2 }
 0x594   :  { %v3987_v6 = vadd.f32 %v3986_v3, %v3985_v33  ;;  %v4014_v50 = vrot.slane %v4013_v38, 1  ;;  %v3992_v63 = vrot.slane %v3991_v40, 1  ;;  %v4019_v42 = vadd.f32 %v4018_v32, %v4017_v39 }
 0x596   :  { %v4015_v27 = vadd.f32 %v4014_v50, %v4013_v38  ;;  %v5822_v34 = vmul.f32 0.125, %v3987_v6  ;;  %v3993_v29 = vadd.f32 %v3992_v63, %v3991_v40  ;;  %v4020_v43 = vrot.slane %v4019_v42, 1 }
 0x598   :  { %v4038_v45 = vmul.f32 0.125, %v4015_v27  ;;  %v4042_v49 = vmul.f32 %v5822_v34, %v5822_v34  ;;  %v4021_v51 = vadd.f32 %v4020_v43, %v4019_v42  ;;  %v5826_v52 = vmul.f32 0.125, %v3993_v29 }
 0x59a   :  { %v4046_v53 = vsub.f32 %v4038_v45, %v4042_v49  ;;  %v4039_v20 = vmul.f32 0.125, %v4021_v51  ;;  %v4043_v11 = vmul.f32 %v5826_v52, %v5826_v52 }
 0x59c   :  { %v4050_v21 = vmax.f32 %v4046_v53, 0.0  ;;  %v4047_v12 = vsub.f32 %v4039_v20, %v4043_v11 }
 0x59e   :  { %v4058_v18 = vadd.f32 1e-05, %v4050_v21  ;;  %v4051_v55 = vmax.f32 %v4047_v12, 0.0 }
 0x5a0   :  { %v4059_v41 = vadd.f32 1e-05, %v4051_v55  ;;  %5404 = vrsqrt.f32 %v4058_v18 }
 0x5a2   :  { %5406 = vrsqrt.f32 %v4059_v41 }
 0x5ad   :  { %v5405_v56 = vpop.eup %5404 }
 0x5af   :  { %v5407_v58 = vpop.eup %5406 }
 0x5b0   :  { %v4070_v60 = vcombine.low %v5405_v56, %v5407_v58 }
 0x5b2   :  { %v4078_v41 = vrot.slane %v4070_v60, %v5630_v35 }
 0x5c6   :  { %v3934_v61 = vpop.f32.mrf.mxu0 }
 0x5c7   :  { %v3975_v62 = vpop.f32.mrf.mxu1 }
 0x5c8   :  { %v5830_v0 = vadd.f32 %v3975_v62, %v3934_v61  ;;  %v3936_v1 = vpop.f32.mrf.mxu0  ;;  %v4055_v61 = vld [vmem:[#allocation10 + $0x6] ss:$8 sm:$0xf] }
 0x5c9   :  { %v3977_v2 = vpop.f32.mrf.mxu1 }
 0x5ca   :  { %v3994_v8 = vrot.slane %v5830_v0, 4  ;;  %v4008_v57 = vmul.f32 %v5830_v0, %v5830_v0  ;;  %v3978_v59 = vadd.f32 %v3977_v2, %v3936_v1  ;;  %v3938_v7 = vpop.f32.mrf.mxu0 }
 0x5cb   :  { %v3979_v9 = vpop.f32.mrf.mxu1 }
 0x5cc   :  { %v3995_v14 = vadd.f32 %v3994_v8, %v5830_v0  ;;  %v4022_v16 = vrot.slane %v4008_v57, 4  ;;  %v4000_v17 = vrot.slane %v3978_v59, 4  ;;  %v4009_v19 = vmul.f32 %v3978_v59, %v3978_v59  ;;  %v3939_v22 = vpop.f32.mrf.mxu0 }
 0x5cd   :  { %v3980_v23 = vpop.f32.mrf.mxu1 }
 0x5ce   :  { %v3996_v25 = vrot.slane %v3995_v14, 2  ;;  %v4023_v54 = vadd.f32 %v4022_v16, %v4008_v57  ;;  %v4001_v24 = vadd.f32 %v4000_v17, %v3978_v59  ;;  %v4028_v26 = vrot.slane %v4009_v19, 4 }
 0x5d0   :  { %v3997_v4 = vadd.f32 %v3996_v25, %v3995_v14  ;;  %v4024_v5 = vrot.slane %v4023_v54, 2  ;;  %v4002_v28 = vrot.slane %v4001_v24, 2  ;;  %v4029_v15 = vadd.f32 %v4028_v26, %v4009_v19 }
 0x5d2   :  { %v3998_v30 = vrot.slane %v3997_v4, 1  ;;  %v4025_v31 = vadd.f32 %v4024_v5, %v4023_v54  ;;  %v4003_v33 = vadd.f32 %v4002_v28, %v4001_v24  ;;  %v4030_v36 = vrot.slane %v4029_v15, 2  ;;  %v4185_v28 = vld [vmem:[#allocation10 + $0x20] ss:$8 sm:$0xf] }
 0x5d4   :  { %v3999_v37 = vadd.f32 %v3998_v30, %v3997_v4  ;;  %v4026_v39 = vrot.slane %v4025_v31, 1  ;;  %v4004_v3 = vrot.slane %v4003_v33, 1  ;;  %v4031_v38 = vadd.f32 %v4030_v36, %v4029_v15  ;;  %v4057_v4 = vld [vmem:[#allocation10 + $0x7] ss:$8 sm:$0xf] }
 0x5d5   :  { %v4191_v30 = vrot.slane %v4185_v28, %v5634_v44 }
 0x5d6   :  { %v4027_v40 = vadd.f32 %v4026_v39, %v4025_v31  ;;  %v4036_v32 = vmul.f32 0.125, %v3999_v37  ;;  %v4005_v6 = vadd.f32 %v4004_v3, %v4003_v33  ;;  %v4032_v50 = vrot.slane %v4031_v38, 1 }
 0x5d7   :  { %v4195_v31 = vrot.slane %v4185_v28, %v5637_v46 }
 0x5d8   :  { %v4040_v63 = vmul.f32 0.125, %v4027_v40  ;;  %v4044_v42 = vmul.f32 %v4036_v32, %v4036_v32  ;;  %v4033_v27 = vadd.f32 %v4032_v50, %v4031_v38  ;;  %v4037_v29 = vmul.f32 0.125, %v4005_v6 }
 0x5da   :  { %v4048_v43 = vsub.f32 %v4040_v63, %v4044_v42  ;;  %v4041_v45 = vmul.f32 0.125, %v4033_v27  ;;  %v4045_v49 = vmul.f32 %v4037_v29, %v4037_v29 }
 0x5dc   :  { %v4052_v51 = vmax.f32 %v4048_v43, 0.0  ;;  %v4049_v53 = vsub.f32 %v4041_v45, %v4045_v49 }
 0x5de   :  { %v4060_v20 = vadd.f32 1e-05, %v4052_v51  ;;  %v4053_v11 = vmax.f32 %v4049_v53, 0.0 }
 0x5e0   :  { %v4061_v21 = vadd.f32 1e-05, %v4053_v11  ;;  %5408 = vrsqrt.f32 %v4060_v20 }
 0x5e2   :  { %5410 = vrsqrt.f32 %v4061_v21 }
 0x5ed   :  { %v5409_v12 = vpop.eup %5408 }
 0x5ef   :  { %v5411_v18 = vpop.eup %5410 }
 0x5f0   :  { %v4071_v55 = vcombine.low %v5409_v12, %v5411_v18 }
 0x5f2   :  { %v4085_v56 = vrot.slane %v4071_v55, %v5630_v35 }
 0x5f4   :  { %v4086_v58 = vcombine.low %v4078_v41, %v4085_v56 }
 0x5f6   :  { %v4093_v62 = vrot.slane %v4086_v58, %v5630_v35 }
 0x5f8   :  { %v4095_v1 = vmul.f32 %v4093_v62, %v4055_v61 }
 0x5fa   :  { %v4100_v2 = vrot.slane %v4095_v1, %v5634_v44  ;;  %v4104_v8 = vrot.slane %v4095_v1, %v5637_v46  ;;  %v4108_v57 = vrot.slane %v4095_v1, %v5639_v47  ;;  %v4112_v7 = vrot.slane %v4095_v1, %v5641_v48 }
 0x5fc   :  { %v4117_v9 = vmul.f32 %v4100_v2, %v5822_v34  ;;  %v4118_v14 = vmul.f32 %v4104_v8, %v5826_v52  ;;  %v4119_v60 = vmul.f32 %v4108_v57, %v4036_v32  ;;  %v4120_v16 = vmul.f32 %v4112_v7, %v4037_v29 }
 0x5fd   :  { %v4151_v17 = vmul.f32 %v4100_v2, %v5810_v13  ;;  %v4152_v19 = vmul.f32 %v4104_v8, %v5815_v10  ;;  %v4154_v22 = vmul.f32 %v4112_v7, %v3978_v59  ;;  %v4153_v52 = vmul.f32 %v4108_v57, %v5830_v0 }
 0x5fe   :  { %v4125_v23 = vcombine.low %v4117_v9, %v4118_v14  ;;  %v4126_v25 = vcombine.low %v4119_v60, %v4120_v16  ;;  %v4199_v0 = vrot.slane %v4185_v28, %v5639_v47  ;;  %v4203_v32 = vrot.slane %v4185_v28, %v5641_v48 }
 0x600   :  { %v4133_v54 = vrot.slane %v4125_v23, %v5630_v35  ;;  %v4140_v24 = vrot.slane %v4126_v25, %v5630_v35 }
 0x602   :  { %v4141_v26 = vcombine.low %v4133_v54, %v4140_v24 }
 0x604   :  { %v4148_v5 = vrot.slane %v4141_v26, %v5630_v35 }
 0x606   :  { %v4150_v34 = vsub.f32 %v4057_v4, %v4148_v5 }
 0x608   :  { %v4159_v15 = vrot.slane %v4150_v34, %v5634_v44  ;;  %v4163_v13 = vrot.slane %v4150_v34, %v5637_v46  ;;  %v4167_v10 = vrot.slane %v4150_v34, %v5639_v47  ;;  %v4171_v59 = vrot.slane %v4150_v34, %v5641_v48  ;;  %v4186_v46 = vld [vmem:[#allocation10 + $0x21] ss:$0 sm:$0xff] }
 0x60a   :  { %v4176_v33 = vadd.f32 %v4159_v15, %v4151_v17  ;;  %v4177_v36 = vadd.f32 %v4163_v13, %v4152_v19  ;;  %v4178_v37 = vadd.f32 %v4167_v10, %v4153_v52  ;;  %v4179_v35 = vadd.f32 %v4171_v59, %v4154_v22 }
 0x60c   :  { %v4180_v39 = vmax.f32 %v4176_v33, 0.0  ;;  %v4181_v3 = vmax.f32 %v4177_v36, 0.0  ;;  %v4182_v38 = vmax.f32 %v4178_v37, 0.0  ;;  %v4183_v40 = vmax.f32 %v4179_v35, 0.0 }
 0x60e   :  { %v4208_v6 = vmul.f32 %v4191_v30, %v4180_v39  ;;  %v4209_v50 = vmul.f32 %v4195_v31, %v4181_v3  ;;  %v4210_v63 = vmul.f32 %v4199_v0, %v4182_v38  ;;  %v4211_v27 = vmul.f32 %v4203_v32, %v4183_v40 }
 0x610   :  { %v4212_v42 = vadd.f32 %v4209_v50, %v4208_v6 }
 0x612   :  { %v4213_v44 = vadd.f32 %v4212_v42, %v4210_v63 }
 0x614   :  { %v4214_v29 = vadd.f32 %v4213_v44, %v4211_v27 }
 0x616   :  { %4215 = vadd.xlane.f32.xlu0 %v4214_v29 }
 0x69f   :  { %v4216_v43 = vpop.xlane.xlu0 %4215 }
 0x6a0   :  { %v4217_v45 = vadd.f32 %v4216_v43, %v4186_v46 }
 0x6a2   :  { %4219 = vst.msk [vmem:[%s5868_s6] sm:$0xff] %vm4218_vm0, %v4217_v45 }
 0x6a3   :  { %4224 = vsyncpa [#allocation7], 1 }
 0x6a4   :  { %4225 = vsyncpa [#allocation9], 1 }
 0x6a5   :  { %4226 = vsyncmov [#allocation5] }
 0x6a8   :  { %s4227_s27 = vpop.sfrf %4226 }
 0x6a9   :  { %p4694_p2 = scmp.ne.s32.totalorder %s4227_s27, 0 }
 0x6ab   :  { %4231 = shalt.err (%p4694_p2)  }
 0x6ac   :  { %4233 = vsyncmov [#allocation5 + $0x1] }
 0x6af   :  { %s4234_s28 = vpop.sfrf %4233 }
 0x6b0   :  { %p4695_p3 = scmp.ne.s32.totalorder %s4234_s28, 0 }
 0x6b2   :  { %4238 = shalt.err (%p4695_p3)  }
 0x6b3   :  { %4240 = vsyncmov [#allocation5 + $0x2] }
 0x6b6   :  { %s4241_s29 = vpop.sfrf %4240 }
 0x6b7   :  { %p4696_p4 = scmp.ne.s32.totalorder %s4241_s29, 0 }
 0x6b9   :  { %4245 = shalt.err (%p4696_p4)  }

</bundles_post_ra>
